<compile_context>
chip_gen: v7x
topology: tpu7x:2x2x1
jax: 0.10.0
libtpu: 0.0.40
codegen_flags: <defaults>
</compile_context>

<pallas_src>
import functools
import math

import numpy as np
import jax
import jax.numpy as jnp
from jax.experimental import pallas as pl
from jax.experimental.pallas import tpu as pltpu  # noqa: F401  (kept for parity with template)


# ---------------------------------------------------------------------------
# Fused kernel: all LSTM layers + fc + sigmoid in one invocation (no grid).
# ---------------------------------------------------------------------------
def _fused_nn_kernel(num_layers, B, T, H, *refs):
    """Ref layout (in order):

      x_ref                 : (T*B, E)   time-major flattened input
      per layer l (3 refs)  : w_ih (Din, 4H), w_hh (H, 4H), b (1, 4H)
                              gate columns in PyTorch order [i | f | g | o]
      w_fc_ref              : (H, 1)
      b_fc_ref              : (1, 1)
      out_ref               : (B, 1)     final sigmoid output
    """
    x_ref = refs[0]
    layer_refs = refs[1:1 + 3 * num_layers]
    w_fc_ref = refs[1 + 3 * num_layers]
    b_fc_ref = refs[2 + 3 * num_layers]
    out_ref = refs[3 + 3 * num_layers]

    # Load every weight once as a value (whole working set is a few dozen
    # vregs), so the unrolled recurrence never touches VMEM on its chain.
    w_ih = [layer_refs[3 * l + 0][...] for l in range(num_layers)]
    w_hh = [layer_refs[3 * l + 1][...] for l in range(num_layers)]
    bias = [layer_refs[3 * l + 2][...] for l in range(num_layers)]

    # Layer 0: input projection hoisted over the full sequence -> a single
    # lane-dense (T*B, 4H) = (16, 128) matmul, kept as a value (2 vregs).
    gx0 = (
        jnp.dot(x_ref[...], w_ih[0], preferred_element_type=jnp.float32)
        + bias[0]
    )

    def lstm_step(gates, c_prev):
        # gates: (B, 4H) packed in PyTorch order [i | f | g | o].
        sig = jax.nn.sigmoid(gates)                  # 1 full-vreg EUP push
        i_g = sig[:, 0 * H:1 * H]
        f_g = sig[:, 1 * H:2 * H]
        o_g = sig[:, 3 * H:4 * H]
        g_g = jnp.tanh(gates[:, 2 * H:3 * H])        # 1 EUP push
        c_new = f_g * c_prev + i_g * g_g
        h_new = o_g * jnp.tanh(c_new)                # 1 EUP push
        return h_new, c_new

    h = [jnp.zeros((B, H), jnp.float32) for _ in range(num_layers)]
    c = [jnp.zeros((B, H), jnp.float32) for _ in range(num_layers)]
    # Per-timestep hidden states of layer l (< last), consumed by layer l+1.
    h_hist = [[None] * T for _ in range(num_layers)]

    # Software wavefront: global step s runs layer l's timestep t = s - l.
    # Layer l at step t only needs layer l-1's h_t, produced one global step
    # earlier, so the layers' recurrences overlap in the unrolled schedule.
    for s in range(T + num_layers - 1):
        for l in range(num_layers):
            t = s - l
            if t < 0 or t >= T:
                continue
            if l == 0:
                gx_t = gx0[t * B:(t + 1) * B, :]     # static value slice
            else:
                # Per-step input projection; its operand is one wavefront
                # step old, so this matmul sits off the critical h-chain.
                gx_t = (
                    jnp.dot(h_hist[l - 1][t], w_ih[l],
                            preferred_element_type=jnp.float32)
                    + bias[l]
                )
            gates = gx_t + jnp.dot(
                h[l], w_hh[l], preferred_element_type=jnp.float32)
            h[l], c[l] = lstm_step(gates, c[l])
            if l < num_layers - 1:
                h_hist[l][t] = h[l]

    # ---- fc(H -> 1) + sigmoid on the last hidden state of the last layer. --
    logits = (
        jnp.dot(h[num_layers - 1], w_fc_ref[...],
                preferred_element_type=jnp.float32)
        + b_fc_ref[...]
    )
    out_ref[...] = jax.nn.sigmoid(logits).astype(out_ref.dtype)


# ---------------------------------------------------------------------------
# Wrapper
# ---------------------------------------------------------------------------
def nn_forward(x, params):
    """Equivalent of NN.forward.  x: (B, T, E) float32 -> (B, 1) float32."""
    B, T, E = x.shape
    num_layers = len(params["lstm"])
    H = params["lstm"][0][1].shape[0]            # w_hh: (H, 4H)

    # Single tiny (2 KB) time-major flatten outside the kernel so all
    # in-kernel per-timestep slices are static and contiguous.
    x_seq = jnp.transpose(x, (1, 0, 2)).reshape(T * B, E)

    flat_weights = []
    for (w_ih, w_hh, b) in params["lstm"]:
        flat_weights += [w_ih, w_hh, b]
    flat_weights += [params["w_fc"], params["b_fc"]]

    kernel = functools.partial(_fused_nn_kernel, num_layers, B, T, H)

    # Advisory cost estimate (latency-bound kernel; keeps XLA from
    # pessimistically serializing surrounding ops against the custom call).
    flops = (
        2 * T * B * 4 * H * E                              # layer-0 x-proj
        + 2 * T * B * 4 * H * H * (2 * num_layers - 1)     # recurrent + l>0 x-proj
        + 2 * B * H                                        # fc
    )
    transcendentals = num_layers * T * B * 6 * H
    bytes_accessed = 4 * (
        T * B * E
        + sum(int(w.size) for trip in params["lstm"] for w in trip)
        + int(params["w_fc"].size) + int(params["b_fc"].size)
        + B
    )

    return pl.pallas_call(
        kernel,
        out_shape=jax.ShapeDtypeStruct((B, 1), jnp.float32),
        cost_estimate=pl.CostEstimate(
            flops=flops,
            transcendentals=transcendentals,
            bytes_accessed=bytes_accessed,
        ),
    )(x_seq, *flat_weights)


# ---------------------------------------------------------------------------
# Deterministic parameter init (PyTorch-style U(-1/sqrt(H), 1/sqrt(H))),
# stored lane-packed: (Din, 4H) / (H, 4H) / (1, 4H), gate order [i, f, g, o].
# ---------------------------------------------------------------------------
def init_params(key, embed_size, hidden_size, num_layers):
    H = hidden_size
    scale = 1.0 / math.sqrt(H)
    params = {"lstm": []}
    for layer in range(num_layers):
        in_size = embed_size if layer == 0 else H
        key, k1, k2, k3, k4 = jax.random.split(key, 5)
        w_ih_pt = jax.random.uniform(k1, (4 * H, in_size), jnp.float32, -scale, scale)
        w_hh_pt = jax.random.uniform(k2, (4 * H, H), jnp.float32, -scale, scale)
        b_ih = jax.random.uniform(k3, (4 * H,), jnp.float32, -scale, scale)
        b_hh = jax.random.uniform(k4, (4 * H,), jnp.float32, -scale, scale)
        # Lane-packed: x @ w_ih / h @ w_hh give (B, 4H) with gate columns in
        # exactly the PyTorch row order [i | f | g | o].
        w_ih = w_ih_pt.T                       # (in, 4H)
        w_hh = w_hh_pt.T                       # (H, 4H)
        b = (b_ih + b_hh).reshape(1, 4 * H)    # summed bias, same order
        params["lstm"].append((w_ih, w_hh, b))
    key, k5, k6 = jax.random.split(key, 3)
    w_fc = jax.random.uniform(k5, (1, H), jnp.float32, -scale, scale).T     # (H, 1)
    b_fc = jax.random.uniform(k6, (1,), jnp.float32, -scale, scale).reshape(1, 1)
    params["w_fc"] = w_fc
    params["b_fc"] = b_fc
    return params


# ---------------------------------------------------------------------------
# Pure-JAX reference (same math) for a correctness check
# ---------------------------------------------------------------------------
def nn_forward_ref(x, params):
    B, T, _ = x.shape
    layer_in = x  # (B, T, Din)
    for (w_ih, w_hh, b) in params["lstm"]:
        H = w_hh.shape[0]
        h = jnp.zeros((B, H), jnp.float32)
        c = jnp.zeros((B, H), jnp.float32)
        outs = []
        for t in range(T):
            xt = layer_in[:, t, :]
            gates = xt @ w_ih + h @ w_hh + b          # (B, 4H), [i|f|g|o]
            i_g = jax.nn.sigmoid(gates[:, 0 * H:1 * H])
            f_g = jax.nn.sigmoid(gates[:, 1 * H:2 * H])
            g_g = jnp.tanh(gates[:, 2 * H:3 * H])
            o_g = jax.nn.sigmoid(gates[:, 3 * H:4 * H])
            c = f_g * c + i_g * g_g
            h = o_g * jnp.tanh(c)
            outs.append(h)
        layer_in = jnp.stack(outs, axis=1)            # (B, T, H)
    h_last = layer_in[:, -1, :]
    return jax.nn.sigmoid(h_last @ params["w_fc"] + params["b_fc"])


# ---------------------------------------------------------------------------
if __name__ == "__main__":
    B, T = 2, 8
    embed_size, hidden_size, num_layers = 32, 32, 2

    key = jax.random.PRNGKey(0)
    key, pkey, xkey = jax.random.split(key, 3)
    params = init_params(pkey, embed_size, hidden_size, num_layers)
    x = jax.random.normal(xkey, (B, T, embed_size), jnp.float32)

    out = jax.block_until_ready(nn_forward(x, params))
    ref = jax.block_until_ready(nn_forward_ref(x, params))

    assert out.shape == (B, 1)
    np.testing.assert_allclose(np.asarray(out), np.asarray(ref), rtol=2e-4, atol=1e-5)

    print("KERNEL_OK")
</pallas_src>

<mosaic_0001>
module attributes {stable_mosaic.version = 11 : i64} {
  func.func @_fused_nn_kernel(%arg0: memref<16x32xf32, #tpu.memory_space<vmem>>, %arg1: memref<32x128xf32, #tpu.memory_space<vmem>>, %arg2: memref<32x128xf32, #tpu.memory_space<vmem>>, %arg3: memref<1x128xf32, #tpu.memory_space<vmem>>, %arg4: memref<32x128xf32, #tpu.memory_space<vmem>>, %arg5: memref<32x128xf32, #tpu.memory_space<vmem>>, %arg6: memref<1x128xf32, #tpu.memory_space<vmem>>, %arg7: memref<32x1xf32, #tpu.memory_space<vmem>>, %arg8: memref<1x1xf32, #tpu.memory_space<vmem>>, %arg9: memref<2x1xf32, #tpu.memory_space<vmem>>) attributes {dimension_semantics = [], scalar_prefetch = 0 : i64, scratch_operands = 0 : i64, tpu.core_type = #tpu.core_type<tc>} {
    %c0 = arith.constant 0 : index
    %c0_0 = arith.constant 0 : index
    %0 = vector.load %arg1[%c0, %c0_0] : memref<32x128xf32, #tpu.memory_space<vmem>>, vector<32x128xf32>
    %c0_1 = arith.constant 0 : index
    %c0_2 = arith.constant 0 : index
    %1 = vector.load %arg4[%c0_1, %c0_2] : memref<32x128xf32, #tpu.memory_space<vmem>>, vector<32x128xf32>
    %c0_3 = arith.constant 0 : index
    %c0_4 = arith.constant 0 : index
    %2 = vector.load %arg2[%c0_3, %c0_4] : memref<32x128xf32, #tpu.memory_space<vmem>>, vector<32x128xf32>
    %c0_5 = arith.constant 0 : index
    %c0_6 = arith.constant 0 : index
    %3 = vector.load %arg5[%c0_5, %c0_6] : memref<32x128xf32, #tpu.memory_space<vmem>>, vector<32x128xf32>
    %c0_7 = arith.constant 0 : index
    %c0_8 = arith.constant 0 : index
    %4 = vector.load %arg3[%c0_7, %c0_8] : memref<1x128xf32, #tpu.memory_space<vmem>>, vector<1x128xf32>
    %c0_9 = arith.constant 0 : index
    %c0_10 = arith.constant 0 : index
    %5 = vector.load %arg6[%c0_9, %c0_10] : memref<1x128xf32, #tpu.memory_space<vmem>>, vector<1x128xf32>
    %c0_11 = arith.constant 0 : index
    %c0_12 = arith.constant 0 : index
    %6 = vector.load %arg0[%c0_11, %c0_12] : memref<16x32xf32, #tpu.memory_space<vmem>>, vector<16x32xf32>
    %cst = arith.constant dense<0.000000e+00> : vector<16x128xf32>
    %7 = tpu.matmul %6, %0, %cst {dimension_numbers = #tpu.dot_dimension_numbers<[1], [0], [0], [1], [0, 0, 1, 1], [], []>} : vector<16x32xf32>, vector<32x128xf32>, vector<16x128xf32> -> vector<16x128xf32>
    %8 = vector.broadcast %4 : vector<1x128xf32> to vector<16x128xf32>
    %9 = arith.addf %7, %8 : vector<16x128xf32>
    %cst_13 = arith.constant 0.000000e+00 : f32
    %10 = vector.broadcast %cst_13 : f32 to vector<2x32xf32>
    %cst_14 = arith.constant 0.000000e+00 : f32
    %11 = vector.broadcast %cst_14 : f32 to vector<2x32xf32>
    %cst_15 = arith.constant 0.000000e+00 : f32
    %12 = vector.broadcast %cst_15 : f32 to vector<2x32xf32>
    %cst_16 = arith.constant 0.000000e+00 : f32
    %13 = vector.broadcast %cst_16 : f32 to vector<2x32xf32>
    %14 = vector.extract_strided_slice %9 {offsets = [0, 0], sizes = [2, 128], strides = [1, 1]} : vector<16x128xf32> to vector<2x128xf32>
    %cst_17 = arith.constant dense<0.000000e+00> : vector<2x128xf32>
    %15 = tpu.matmul %10, %2, %cst_17 {dimension_numbers = #tpu.dot_dimension_numbers<[1], [0], [0], [1], [0, 0, 1, 1], [], []>} : vector<2x32xf32>, vector<32x128xf32>, vector<2x128xf32> -> vector<2x128xf32>
    %16 = arith.addf %14, %15 : vector<2x128xf32>
    %17 = arith.negf %16 : vector<2x128xf32>
    %18 = math.exp %17 : vector<2x128xf32>
    %cst_18 = arith.constant 1.000000e+00 : f32
    %19 = vector.broadcast %cst_18 : f32 to vector<2x128xf32>
    %20 = arith.addf %19, %18 : vector<2x128xf32>
    %21 = arith.divf %19, %20 : vector<2x128xf32>
    %22 = vector.extract_strided_slice %21 {offsets = [0, 0], sizes = [2, 32], strides = [1, 1]} : vector<2x128xf32> to vector<2x32xf32>
    %23 = vector.extract_strided_slice %21 {offsets = [0, 32], sizes = [2, 32], strides = [1, 1]} : vector<2x128xf32> to vector<2x32xf32>
    %24 = vector.extract_strided_slice %21 {offsets = [0, 96], sizes = [2, 32], strides = [1, 1]} : vector<2x128xf32> to vector<2x32xf32>
    %25 = vector.extract_strided_slice %16 {offsets = [0, 64], sizes = [2, 32], strides = [1, 1]} : vector<2x128xf32> to vector<2x32xf32>
    %26 = math.tanh %25 : vector<2x32xf32>
    %27 = arith.mulf %23, %12 : vector<2x32xf32>
    %28 = arith.mulf %22, %26 : vector<2x32xf32>
    %29 = arith.addf %27, %28 : vector<2x32xf32>
    %30 = math.tanh %29 : vector<2x32xf32>
    %31 = arith.mulf %24, %30 : vector<2x32xf32>
    %32 = vector.extract_strided_slice %9 {offsets = [2, 0], sizes = [2, 128], strides = [1, 1]} : vector<16x128xf32> to vector<2x128xf32>
    %cst_19 = arith.constant dense<0.000000e+00> : vector<2x128xf32>
    %33 = tpu.matmul %31, %2, %cst_19 {dimension_numbers = #tpu.dot_dimension_numbers<[1], [0], [0], [1], [0, 0, 1, 1], [], []>} : vector<2x32xf32>, vector<32x128xf32>, vector<2x128xf32> -> vector<2x128xf32>
    %34 = arith.addf %32, %33 : vector<2x128xf32>
    %35 = arith.negf %34 : vector<2x128xf32>
    %36 = math.exp %35 : vector<2x128xf32>
    %cst_20 = arith.constant 1.000000e+00 : f32
    %37 = vector.broadcast %cst_20 : f32 to vector<2x128xf32>
    %38 = arith.addf %37, %36 : vector<2x128xf32>
    %39 = arith.divf %37, %38 : vector<2x128xf32>
    %40 = vector.extract_strided_slice %39 {offsets = [0, 0], sizes = [2, 32], strides = [1, 1]} : vector<2x128xf32> to vector<2x32xf32>
    %41 = vector.extract_strided_slice %39 {offsets = [0, 32], sizes = [2, 32], strides = [1, 1]} : vector<2x128xf32> to vector<2x32xf32>
    %42 = vector.extract_strided_slice %39 {offsets = [0, 96], sizes = [2, 32], strides = [1, 1]} : vector<2x128xf32> to vector<2x32xf32>
    %43 = vector.extract_strided_slice %34 {offsets = [0, 64], sizes = [2, 32], strides = [1, 1]} : vector<2x128xf32> to vector<2x32xf32>
    %44 = math.tanh %43 : vector<2x32xf32>
    %45 = arith.mulf %41, %29 : vector<2x32xf32>
    %46 = arith.mulf %40, %44 : vector<2x32xf32>
    %47 = arith.addf %45, %46 : vector<2x32xf32>
    %48 = math.tanh %47 : vector<2x32xf32>
    %49 = arith.mulf %42, %48 : vector<2x32xf32>
    %cst_21 = arith.constant dense<0.000000e+00> : vector<2x128xf32>
    %50 = tpu.matmul %31, %1, %cst_21 {dimension_numbers = #tpu.dot_dimension_numbers<[1], [0], [0], [1], [0, 0, 1, 1], [], []>} : vector<2x32xf32>, vector<32x128xf32>, vector<2x128xf32> -> vector<2x128xf32>
    %51 = vector.broadcast %5 : vector<1x128xf32> to vector<2x128xf32>
    %52 = arith.addf %50, %51 : vector<2x128xf32>
    %cst_22 = arith.constant dense<0.000000e+00> : vector<2x128xf32>
    %53 = tpu.matmul %11, %3, %cst_22 {dimension_numbers = #tpu.dot_dimension_numbers<[1], [0], [0], [1], [0, 0, 1, 1], [], []>} : vector<2x32xf32>, vector<32x128xf32>, vector<2x128xf32> -> vector<2x128xf32>
    %54 = arith.addf %52, %53 : vector<2x128xf32>
    %55 = arith.negf %54 : vector<2x128xf32>
    %56 = math.exp %55 : vector<2x128xf32>
    %cst_23 = arith.constant 1.000000e+00 : f32
    %57 = vector.broadcast %cst_23 : f32 to vector<2x128xf32>
    %58 = arith.addf %57, %56 : vector<2x128xf32>
    %59 = arith.divf %57, %58 : vector<2x128xf32>
    %60 = vector.extract_strided_slice %59 {offsets = [0, 0], sizes = [2, 32], strides = [1, 1]} : vector<2x128xf32> to vector<2x32xf32>
    %61 = vector.extract_strided_slice %59 {offsets = [0, 32], sizes = [2, 32], strides = [1, 1]} : vector<2x128xf32> to vector<2x32xf32>
    %62 = vector.extract_strided_slice %59 {offsets = [0, 96], sizes = [2, 32], strides = [1, 1]} : vector<2x128xf32> to vector<2x32xf32>
    %63 = vector.extract_strided_slice %54 {offsets = [0, 64], sizes = [2, 32], strides = [1, 1]} : vector<2x128xf32> to vector<2x32xf32>
    %64 = math.tanh %63 : vector<2x32xf32>
    %65 = arith.mulf %61, %13 : vector<2x32xf32>
    %66 = arith.mulf %60, %64 : vector<2x32xf32>
    %67 = arith.addf %65, %66 : vector<2x32xf32>
    %68 = math.tanh %67 : vector<2x32xf32>
    %69 = arith.mulf %62, %68 : vector<2x32xf32>
    %70 = vector.extract_strided_slice %9 {offsets = [4, 0], sizes = [2, 128], strides = [1, 1]} : vector<16x128xf32> to vector<2x128xf32>
    %cst_24 = arith.constant dense<0.000000e+00> : vector<2x128xf32>
    %71 = tpu.matmul %49, %2, %cst_24 {dimension_numbers = #tpu.dot_dimension_numbers<[1], [0], [0], [1], [0, 0, 1, 1], [], []>} : vector<2x32xf32>, vector<32x128xf32>, vector<2x128xf32> -> vector<2x128xf32>
    %72 = arith.addf %70, %71 : vector<2x128xf32>
    %73 = arith.negf %72 : vector<2x128xf32>
    %74 = math.exp %73 : vector<2x128xf32>
    %cst_25 = arith.constant 1.000000e+00 : f32
    %75 = vector.broadcast %cst_25 : f32 to vector<2x128xf32>
    %76 = arith.addf %75, %74 : vector<2x128xf32>
    %77 = arith.divf %75, %76 : vector<2x128xf32>
    %78 = vector.extract_strided_slice %77 {offsets = [0, 0], sizes = [2, 32], strides = [1, 1]} : vector<2x128xf32> to vector<2x32xf32>
    %79 = vector.extract_strided_slice %77 {offsets = [0, 32], sizes = [2, 32], strides = [1, 1]} : vector<2x128xf32> to vector<2x32xf32>
    %80 = vector.extract_strided_slice %77 {offsets = [0, 96], sizes = [2, 32], strides = [1, 1]} : vector<2x128xf32> to vector<2x32xf32>
    %81 = vector.extract_strided_slice %72 {offsets = [0, 64], sizes = [2, 32], strides = [1, 1]} : vector<2x128xf32> to vector<2x32xf32>
    %82 = math.tanh %81 : vector<2x32xf32>
    %83 = arith.mulf %79, %47 : vector<2x32xf32>
    %84 = arith.mulf %78, %82 : vector<2x32xf32>
    %85 = arith.addf %83, %84 : vector<2x32xf32>
    %86 = math.tanh %85 : vector<2x32xf32>
    %87 = arith.mulf %80, %86 : vector<2x32xf32>
    %cst_26 = arith.constant dense<0.000000e+00> : vector<2x128xf32>
    %88 = tpu.matmul %49, %1, %cst_26 {dimension_numbers = #tpu.dot_dimension_numbers<[1], [0], [0], [1], [0, 0, 1, 1], [], []>} : vector<2x32xf32>, vector<32x128xf32>, vector<2x128xf32> -> vector<2x128xf32>
    %89 = vector.broadcast %5 : vector<1x128xf32> to vector<2x128xf32>
    %90 = arith.addf %88, %89 : vector<2x128xf32>
    %cst_27 = arith.constant dense<0.000000e+00> : vector<2x128xf32>
    %91 = tpu.matmul %69, %3, %cst_27 {dimension_numbers = #tpu.dot_dimension_numbers<[1], [0], [0], [1], [0, 0, 1, 1], [], []>} : vector<2x32xf32>, vector<32x128xf32>, vector<2x128xf32> -> vector<2x128xf32>
    %92 = arith.addf %90, %91 : vector<2x128xf32>
    %93 = arith.negf %92 : vector<2x128xf32>
    %94 = math.exp %93 : vector<2x128xf32>
    %cst_28 = arith.constant 1.000000e+00 : f32
    %95 = vector.broadcast %cst_28 : f32 to vector<2x128xf32>
    %96 = arith.addf %95, %94 : vector<2x128xf32>
    %97 = arith.divf %95, %96 : vector<2x128xf32>
    %98 = vector.extract_strided_slice %97 {offsets = [0, 0], sizes = [2, 32], strides = [1, 1]} : vector<2x128xf32> to vector<2x32xf32>
    %99 = vector.extract_strided_slice %97 {offsets = [0, 32], sizes = [2, 32], strides = [1, 1]} : vector<2x128xf32> to vector<2x32xf32>
    %100 = vector.extract_strided_slice %97 {offsets = [0, 96], sizes = [2, 32], strides = [1, 1]} : vector<2x128xf32> to vector<2x32xf32>
    %101 = vector.extract_strided_slice %92 {offsets = [0, 64], sizes = [2, 32], strides = [1, 1]} : vector<2x128xf32> to vector<2x32xf32>
    %102 = math.tanh %101 : vector<2x32xf32>
    %103 = arith.mulf %99, %67 : vector<2x32xf32>
    %104 = arith.mulf %98, %102 : vector<2x32xf32>
    %105 = arith.addf %103, %104 : vector<2x32xf32>
    %106 = math.tanh %105 : vector<2x32xf32>
    %107 = arith.mulf %100, %106 : vector<2x32xf32>
    %108 = vector.extract_strided_slice %9 {offsets = [6, 0], sizes = [2, 128], strides = [1, 1]} : vector<16x128xf32> to vector<2x128xf32>
    %cst_29 = arith.constant dense<0.000000e+00> : vector<2x128xf32>
    %109 = tpu.matmul %87, %2, %cst_29 {dimension_numbers = #tpu.dot_dimension_numbers<[1], [0], [0], [1], [0, 0, 1, 1], [], []>} : vector<2x32xf32>, vector<32x128xf32>, vector<2x128xf32> -> vector<2x128xf32>
    %110 = arith.addf %108, %109 : vector<2x128xf32>
    %111 = arith.negf %110 : vector<2x128xf32>
    %112 = math.exp %111 : vector<2x128xf32>
    %cst_30 = arith.constant 1.000000e+00 : f32
    %113 = vector.broadcast %cst_30 : f32 to vector<2x128xf32>
    %114 = arith.addf %113, %112 : vector<2x128xf32>
    %115 = arith.divf %113, %114 : vector<2x128xf32>
    %116 = vector.extract_strided_slice %115 {offsets = [0, 0], sizes = [2, 32], strides = [1, 1]} : vector<2x128xf32> to vector<2x32xf32>
    %117 = vector.extract_strided_slice %115 {offsets = [0, 32], sizes = [2, 32], strides = [1, 1]} : vector<2x128xf32> to vector<2x32xf32>
    %118 = vector.extract_strided_slice %115 {offsets = [0, 96], sizes = [2, 32], strides = [1, 1]} : vector<2x128xf32> to vector<2x32xf32>
    %119 = vector.extract_strided_slice %110 {offsets = [0, 64], sizes = [2, 32], strides = [1, 1]} : vector<2x128xf32> to vector<2x32xf32>
    %120 = math.tanh %119 : vector<2x32xf32>
    %121 = arith.mulf %117, %85 : vector<2x32xf32>
    %122 = arith.mulf %116, %120 : vector<2x32xf32>
    %123 = arith.addf %121, %122 : vector<2x32xf32>
    %124 = math.tanh %123 : vector<2x32xf32>
    %125 = arith.mulf %118, %124 : vector<2x32xf32>
    %cst_31 = arith.constant dense<0.000000e+00> : vector<2x128xf32>
    %126 = tpu.matmul %87, %1, %cst_31 {dimension_numbers = #tpu.dot_dimension_numbers<[1], [0], [0], [1], [0, 0, 1, 1], [], []>} : vector<2x32xf32>, vector<32x128xf32>, vector<2x128xf32> -> vector<2x128xf32>
    %127 = vector.broadcast %5 : vector<1x128xf32> to vector<2x128xf32>
    %128 = arith.addf %126, %127 : vector<2x128xf32>
    %cst_32 = arith.constant dense<0.000000e+00> : vector<2x128xf32>
    %129 = tpu.matmul %107, %3, %cst_32 {dimension_numbers = #tpu.dot_dimension_numbers<[1], [0], [0], [1], [0, 0, 1, 1], [], []>} : vector<2x32xf32>, vector<32x128xf32>, vector<2x128xf32> -> vector<2x128xf32>
    %130 = arith.addf %128, %129 : vector<2x128xf32>
    %131 = arith.negf %130 : vector<2x128xf32>
    %132 = math.exp %131 : vector<2x128xf32>
    %cst_33 = arith.constant 1.000000e+00 : f32
    %133 = vector.broadcast %cst_33 : f32 to vector<2x128xf32>
    %134 = arith.addf %133, %132 : vector<2x128xf32>
    %135 = arith.divf %133, %134 : vector<2x128xf32>
    %136 = vector.extract_strided_slice %135 {offsets = [0, 0], sizes = [2, 32], strides = [1, 1]} : vector<2x128xf32> to vector<2x32xf32>
    %137 = vector.extract_strided_slice %135 {offsets = [0, 32], sizes = [2, 32], strides = [1, 1]} : vector<2x128xf32> to vector<2x32xf32>
    %138 = vector.extract_strided_slice %135 {offsets = [0, 96], sizes = [2, 32], strides = [1, 1]} : vector<2x128xf32> to vector<2x32xf32>
    %139 = vector.extract_strided_slice %130 {offsets = [0, 64], sizes = [2, 32], strides = [1, 1]} : vector<2x128xf32> to vector<2x32xf32>
    %140 = math.tanh %139 : vector<2x32xf32>
    %141 = arith.mulf %137, %105 : vector<2x32xf32>
    %142 = arith.mulf %136, %140 : vector<2x32xf32>
    %143 = arith.addf %141, %142 : vector<2x32xf32>
    %144 = math.tanh %143 : vector<2x32xf32>
    %145 = arith.mulf %138, %144 : vector<2x32xf32>
    %146 = vector.extract_strided_slice %9 {offsets = [8, 0], sizes = [2, 128], strides = [1, 1]} : vector<16x128xf32> to vector<2x128xf32>
    %cst_34 = arith.constant dense<0.000000e+00> : vector<2x128xf32>
    %147 = tpu.matmul %125, %2, %cst_34 {dimension_numbers = #tpu.dot_dimension_numbers<[1], [0], [0], [1], [0, 0, 1, 1], [], []>} : vector<2x32xf32>, vector<32x128xf32>, vector<2x128xf32> -> vector<2x128xf32>
    %148 = arith.addf %146, %147 : vector<2x128xf32>
    %149 = arith.negf %148 : vector<2x128xf32>
    %150 = math.exp %149 : vector<2x128xf32>
    %cst_35 = arith.constant 1.000000e+00 : f32
    %151 = vector.broadcast %cst_35 : f32 to vector<2x128xf32>
    %152 = arith.addf %151, %150 : vector<2x128xf32>
    %153 = arith.divf %151, %152 : vector<2x128xf32>
    %154 = vector.extract_strided_slice %153 {offsets = [0, 0], sizes = [2, 32], strides = [1, 1]} : vector<2x128xf32> to vector<2x32xf32>
    %155 = vector.extract_strided_slice %153 {offsets = [0, 32], sizes = [2, 32], strides = [1, 1]} : vector<2x128xf32> to vector<2x32xf32>
    %156 = vector.extract_strided_slice %153 {offsets = [0, 96], sizes = [2, 32], strides = [1, 1]} : vector<2x128xf32> to vector<2x32xf32>
    %157 = vector.extract_strided_slice %148 {offsets = [0, 64], sizes = [2, 32], strides = [1, 1]} : vector<2x128xf32> to vector<2x32xf32>
    %158 = math.tanh %157 : vector<2x32xf32>
    %159 = arith.mulf %155, %123 : vector<2x32xf32>
    %160 = arith.mulf %154, %158 : vector<2x32xf32>
    %161 = arith.addf %159, %160 : vector<2x32xf32>
    %162 = math.tanh %161 : vector<2x32xf32>
    %163 = arith.mulf %156, %162 : vector<2x32xf32>
    %cst_36 = arith.constant dense<0.000000e+00> : vector<2x128xf32>
    %164 = tpu.matmul %125, %1, %cst_36 {dimension_numbers = #tpu.dot_dimension_numbers<[1], [0], [0], [1], [0, 0, 1, 1], [], []>} : vector<2x32xf32>, vector<32x128xf32>, vector<2x128xf32> -> vector<2x128xf32>
    %165 = vector.broadcast %5 : vector<1x128xf32> to vector<2x128xf32>
    %166 = arith.addf %164, %165 : vector<2x128xf32>
    %cst_37 = arith.constant dense<0.000000e+00> : vector<2x128xf32>
    %167 = tpu.matmul %145, %3, %cst_37 {dimension_numbers = #tpu.dot_dimension_numbers<[1], [0], [0], [1], [0, 0, 1, 1], [], []>} : vector<2x32xf32>, vector<32x128xf32>, vector<2x128xf32> -> vector<2x128xf32>
    %168 = arith.addf %166, %167 : vector<2x128xf32>
    %169 = arith.negf %168 : vector<2x128xf32>
    %170 = math.exp %169 : vector<2x128xf32>
    %cst_38 = arith.constant 1.000000e+00 : f32
    %171 = vector.broadcast %cst_38 : f32 to vector<2x128xf32>
    %172 = arith.addf %171, %170 : vector<2x128xf32>
    %173 = arith.divf %171, %172 : vector<2x128xf32>
    %174 = vector.extract_strided_slice %173 {offsets = [0, 0], sizes = [2, 32], strides = [1, 1]} : vector<2x128xf32> to vector<2x32xf32>
    %175 = vector.extract_strided_slice %173 {offsets = [0, 32], sizes = [2, 32], strides = [1, 1]} : vector<2x128xf32> to vector<2x32xf32>
    %176 = vector.extract_strided_slice %173 {offsets = [0, 96], sizes = [2, 32], strides = [1, 1]} : vector<2x128xf32> to vector<2x32xf32>
    %177 = vector.extract_strided_slice %168 {offsets = [0, 64], sizes = [2, 32], strides = [1, 1]} : vector<2x128xf32> to vector<2x32xf32>
    %178 = math.tanh %177 : vector<2x32xf32>
    %179 = arith.mulf %175, %143 : vector<2x32xf32>
    %180 = arith.mulf %174, %178 : vector<2x32xf32>
    %181 = arith.addf %179, %180 : vector<2x32xf32>
    %182 = math.tanh %181 : vector<2x32xf32>
    %183 = arith.mulf %176, %182 : vector<2x32xf32>
    %184 = vector.extract_strided_slice %9 {offsets = [10, 0], sizes = [2, 128], strides = [1, 1]} : vector<16x128xf32> to vector<2x128xf32>
    %cst_39 = arith.constant dense<0.000000e+00> : vector<2x128xf32>
    %185 = tpu.matmul %163, %2, %cst_39 {dimension_numbers = #tpu.dot_dimension_numbers<[1], [0], [0], [1], [0, 0, 1, 1], [], []>} : vector<2x32xf32>, vector<32x128xf32>, vector<2x128xf32> -> vector<2x128xf32>
    %186 = arith.addf %184, %185 : vector<2x128xf32>
    %187 = arith.negf %186 : vector<2x128xf32>
    %188 = math.exp %187 : vector<2x128xf32>
    %cst_40 = arith.constant 1.000000e+00 : f32
    %189 = vector.broadcast %cst_40 : f32 to vector<2x128xf32>
    %190 = arith.addf %189, %188 : vector<2x128xf32>
    %191 = arith.divf %189, %190 : vector<2x128xf32>
    %192 = vector.extract_strided_slice %191 {offsets = [0, 0], sizes = [2, 32], strides = [1, 1]} : vector<2x128xf32> to vector<2x32xf32>
    %193 = vector.extract_strided_slice %191 {offsets = [0, 32], sizes = [2, 32], strides = [1, 1]} : vector<2x128xf32> to vector<2x32xf32>
    %194 = vector.extract_strided_slice %191 {offsets = [0, 96], sizes = [2, 32], strides = [1, 1]} : vector<2x128xf32> to vector<2x32xf32>
    %195 = vector.extract_strided_slice %186 {offsets = [0, 64], sizes = [2, 32], strides = [1, 1]} : vector<2x128xf32> to vector<2x32xf32>
    %196 = math.tanh %195 : vector<2x32xf32>
    %197 = arith.mulf %193, %161 : vector<2x32xf32>
    %198 = arith.mulf %192, %196 : vector<2x32xf32>
    %199 = arith.addf %197, %198 : vector<2x32xf32>
    %200 = math.tanh %199 : vector<2x32xf32>
    %201 = arith.mulf %194, %200 : vector<2x32xf32>
    %cst_41 = arith.constant dense<0.000000e+00> : vector<2x128xf32>
    %202 = tpu.matmul %163, %1, %cst_41 {dimension_numbers = #tpu.dot_dimension_numbers<[1], [0], [0], [1], [0, 0, 1, 1], [], []>} : vector<2x32xf32>, vector<32x128xf32>, vector<2x128xf32> -> vector<2x128xf32>
    %203 = vector.broadcast %5 : vector<1x128xf32> to vector<2x128xf32>
    %204 = arith.addf %202, %203 : vector<2x128xf32>
    %cst_42 = arith.constant dense<0.000000e+00> : vector<2x128xf32>
    %205 = tpu.matmul %183, %3, %cst_42 {dimension_numbers = #tpu.dot_dimension_numbers<[1], [0], [0], [1], [0, 0, 1, 1], [], []>} : vector<2x32xf32>, vector<32x128xf32>, vector<2x128xf32> -> vector<2x128xf32>
    %206 = arith.addf %204, %205 : vector<2x128xf32>
    %207 = arith.negf %206 : vector<2x128xf32>
    %208 = math.exp %207 : vector<2x128xf32>
    %cst_43 = arith.constant 1.000000e+00 : f32
    %209 = vector.broadcast %cst_43 : f32 to vector<2x128xf32>
    %210 = arith.addf %209, %208 : vector<2x128xf32>
    %211 = arith.divf %209, %210 : vector<2x128xf32>
    %212 = vector.extract_strided_slice %211 {offsets = [0, 0], sizes = [2, 32], strides = [1, 1]} : vector<2x128xf32> to vector<2x32xf32>
    %213 = vector.extract_strided_slice %211 {offsets = [0, 32], sizes = [2, 32], strides = [1, 1]} : vector<2x128xf32> to vector<2x32xf32>
    %214 = vector.extract_strided_slice %211 {offsets = [0, 96], sizes = [2, 32], strides = [1, 1]} : vector<2x128xf32> to vector<2x32xf32>
    %215 = vector.extract_strided_slice %206 {offsets = [0, 64], sizes = [2, 32], strides = [1, 1]} : vector<2x128xf32> to vector<2x32xf32>
    %216 = math.tanh %215 : vector<2x32xf32>
    %217 = arith.mulf %213, %181 : vector<2x32xf32>
    %218 = arith.mulf %212, %216 : vector<2x32xf32>
    %219 = arith.addf %217, %218 : vector<2x32xf32>
    %220 = math.tanh %219 : vector<2x32xf32>
    %221 = arith.mulf %214, %220 : vector<2x32xf32>
    %222 = vector.extract_strided_slice %9 {offsets = [12, 0], sizes = [2, 128], strides = [1, 1]} : vector<16x128xf32> to vector<2x128xf32>
    %cst_44 = arith.constant dense<0.000000e+00> : vector<2x128xf32>
    %223 = tpu.matmul %201, %2, %cst_44 {dimension_numbers = #tpu.dot_dimension_numbers<[1], [0], [0], [1], [0, 0, 1, 1], [], []>} : vector<2x32xf32>, vector<32x128xf32>, vector<2x128xf32> -> vector<2x128xf32>
    %224 = arith.addf %222, %223 : vector<2x128xf32>
    %225 = arith.negf %224 : vector<2x128xf32>
    %226 = math.exp %225 : vector<2x128xf32>
    %cst_45 = arith.constant 1.000000e+00 : f32
    %227 = vector.broadcast %cst_45 : f32 to vector<2x128xf32>
    %228 = arith.addf %227, %226 : vector<2x128xf32>
    %229 = arith.divf %227, %228 : vector<2x128xf32>
    %230 = vector.extract_strided_slice %229 {offsets = [0, 0], sizes = [2, 32], strides = [1, 1]} : vector<2x128xf32> to vector<2x32xf32>
    %231 = vector.extract_strided_slice %229 {offsets = [0, 32], sizes = [2, 32], strides = [1, 1]} : vector<2x128xf32> to vector<2x32xf32>
    %232 = vector.extract_strided_slice %229 {offsets = [0, 96], sizes = [2, 32], strides = [1, 1]} : vector<2x128xf32> to vector<2x32xf32>
    %233 = vector.extract_strided_slice %224 {offsets = [0, 64], sizes = [2, 32], strides = [1, 1]} : vector<2x128xf32> to vector<2x32xf32>
    %234 = math.tanh %233 : vector<2x32xf32>
    %235 = arith.mulf %231, %199 : vector<2x32xf32>
    %236 = arith.mulf %230, %234 : vector<2x32xf32>
    %237 = arith.addf %235, %236 : vector<2x32xf32>
    %238 = math.tanh %237 : vector<2x32xf32>
    %239 = arith.mulf %232, %238 : vector<2x32xf32>
    %cst_46 = arith.constant dense<0.000000e+00> : vector<2x128xf32>
    %240 = tpu.matmul %201, %1, %cst_46 {dimension_numbers = #tpu.dot_dimension_numbers<[1], [0], [0], [1], [0, 0, 1, 1], [], []>} : vector<2x32xf32>, vector<32x128xf32>, vector<2x128xf32> -> vector<2x128xf32>
    %241 = vector.broadcast %5 : vector<1x128xf32> to vector<2x128xf32>
    %242 = arith.addf %240, %241 : vector<2x128xf32>
    %cst_47 = arith.constant dense<0.000000e+00> : vector<2x128xf32>
    %243 = tpu.matmul %221, %3, %cst_47 {dimension_numbers = #tpu.dot_dimension_numbers<[1], [0], [0], [1], [0, 0, 1, 1], [], []>} : vector<2x32xf32>, vector<32x128xf32>, vector<2x128xf32> -> vector<2x128xf32>
    %244 = arith.addf %242, %243 : vector<2x128xf32>
    %245 = arith.negf %244 : vector<2x128xf32>
    %246 = math.exp %245 : vector<2x128xf32>
    %cst_48 = arith.constant 1.000000e+00 : f32
    %247 = vector.broadcast %cst_48 : f32 to vector<2x128xf32>
    %248 = arith.addf %247, %246 : vector<2x128xf32>
    %249 = arith.divf %247, %248 : vector<2x128xf32>
    %250 = vector.extract_strided_slice %249 {offsets = [0, 0], sizes = [2, 32], strides = [1, 1]} : vector<2x128xf32> to vector<2x32xf32>
    %251 = vector.extract_strided_slice %249 {offsets = [0, 32], sizes = [2, 32], strides = [1, 1]} : vector<2x128xf32> to vector<2x32xf32>
    %252 = vector.extract_strided_slice %249 {offsets = [0, 96], sizes = [2, 32], strides = [1, 1]} : vector<2x128xf32> to vector<2x32xf32>
    %253 = vector.extract_strided_slice %244 {offsets = [0, 64], sizes = [2, 32], strides = [1, 1]} : vector<2x128xf32> to vector<2x32xf32>
    %254 = math.tanh %253 : vector<2x32xf32>
    %255 = arith.mulf %251, %219 : vector<2x32xf32>
    %256 = arith.mulf %250, %254 : vector<2x32xf32>
    %257 = arith.addf %255, %256 : vector<2x32xf32>
    %258 = math.tanh %257 : vector<2x32xf32>
    %259 = arith.mulf %252, %258 : vector<2x32xf32>
    %260 = vector.extract_strided_slice %9 {offsets = [14, 0], sizes = [2, 128], strides = [1, 1]} : vector<16x128xf32> to vector<2x128xf32>
    %cst_49 = arith.constant dense<0.000000e+00> : vector<2x128xf32>
    %261 = tpu.matmul %239, %2, %cst_49 {dimension_numbers = #tpu.dot_dimension_numbers<[1], [0], [0], [1], [0, 0, 1, 1], [], []>} : vector<2x32xf32>, vector<32x128xf32>, vector<2x128xf32> -> vector<2x128xf32>
    %262 = arith.addf %260, %261 : vector<2x128xf32>
    %263 = arith.negf %262 : vector<2x128xf32>
    %264 = math.exp %263 : vector<2x128xf32>
    %cst_50 = arith.constant 1.000000e+00 : f32
    %265 = vector.broadcast %cst_50 : f32 to vector<2x128xf32>
    %266 = arith.addf %265, %264 : vector<2x128xf32>
    %267 = arith.divf %265, %266 : vector<2x128xf32>
    %268 = vector.extract_strided_slice %267 {offsets = [0, 0], sizes = [2, 32], strides = [1, 1]} : vector<2x128xf32> to vector<2x32xf32>
    %269 = vector.extract_strided_slice %267 {offsets = [0, 32], sizes = [2, 32], strides = [1, 1]} : vector<2x128xf32> to vector<2x32xf32>
    %270 = vector.extract_strided_slice %267 {offsets = [0, 96], sizes = [2, 32], strides = [1, 1]} : vector<2x128xf32> to vector<2x32xf32>
    %271 = vector.extract_strided_slice %262 {offsets = [0, 64], sizes = [2, 32], strides = [1, 1]} : vector<2x128xf32> to vector<2x32xf32>
    %272 = math.tanh %271 : vector<2x32xf32>
    %273 = arith.mulf %269, %237 : vector<2x32xf32>
    %274 = arith.mulf %268, %272 : vector<2x32xf32>
    %275 = arith.addf %273, %274 : vector<2x32xf32>
    %276 = math.tanh %275 : vector<2x32xf32>
    %277 = arith.mulf %270, %276 : vector<2x32xf32>
    %cst_51 = arith.constant dense<0.000000e+00> : vector<2x128xf32>
    %278 = tpu.matmul %239, %1, %cst_51 {dimension_numbers = #tpu.dot_dimension_numbers<[1], [0], [0], [1], [0, 0, 1, 1], [], []>} : vector<2x32xf32>, vector<32x128xf32>, vector<2x128xf32> -> vector<2x128xf32>
    %279 = vector.broadcast %5 : vector<1x128xf32> to vector<2x128xf32>
    %280 = arith.addf %278, %279 : vector<2x128xf32>
    %cst_52 = arith.constant dense<0.000000e+00> : vector<2x128xf32>
    %281 = tpu.matmul %259, %3, %cst_52 {dimension_numbers = #tpu.dot_dimension_numbers<[1], [0], [0], [1], [0, 0, 1, 1], [], []>} : vector<2x32xf32>, vector<32x128xf32>, vector<2x128xf32> -> vector<2x128xf32>
    %282 = arith.addf %280, %281 : vector<2x128xf32>
    %283 = arith.negf %282 : vector<2x128xf32>
    %284 = math.exp %283 : vector<2x128xf32>
    %cst_53 = arith.constant 1.000000e+00 : f32
    %285 = vector.broadcast %cst_53 : f32 to vector<2x128xf32>
    %286 = arith.addf %285, %284 : vector<2x128xf32>
    %287 = arith.divf %285, %286 : vector<2x128xf32>
    %288 = vector.extract_strided_slice %287 {offsets = [0, 0], sizes = [2, 32], strides = [1, 1]} : vector<2x128xf32> to vector<2x32xf32>
    %289 = vector.extract_strided_slice %287 {offsets = [0, 32], sizes = [2, 32], strides = [1, 1]} : vector<2x128xf32> to vector<2x32xf32>
    %290 = vector.extract_strided_slice %287 {offsets = [0, 96], sizes = [2, 32], strides = [1, 1]} : vector<2x128xf32> to vector<2x32xf32>
    %291 = vector.extract_strided_slice %282 {offsets = [0, 64], sizes = [2, 32], strides = [1, 1]} : vector<2x128xf32> to vector<2x32xf32>
    %292 = math.tanh %291 : vector<2x32xf32>
    %293 = arith.mulf %289, %257 : vector<2x32xf32>
    %294 = arith.mulf %288, %292 : vector<2x32xf32>
    %295 = arith.addf %293, %294 : vector<2x32xf32>
    %296 = math.tanh %295 : vector<2x32xf32>
    %297 = arith.mulf %290, %296 : vector<2x32xf32>
    %cst_54 = arith.constant dense<0.000000e+00> : vector<2x128xf32>
    %298 = tpu.matmul %277, %1, %cst_54 {dimension_numbers = #tpu.dot_dimension_numbers<[1], [0], [0], [1], [0, 0, 1, 1], [], []>} : vector<2x32xf32>, vector<32x128xf32>, vector<2x128xf32> -> vector<2x128xf32>
    %299 = vector.broadcast %5 : vector<1x128xf32> to vector<2x128xf32>
    %300 = arith.addf %298, %299 : vector<2x128xf32>
    %cst_55 = arith.constant dense<0.000000e+00> : vector<2x128xf32>
    %301 = tpu.matmul %297, %3, %cst_55 {dimension_numbers = #tpu.dot_dimension_numbers<[1], [0], [0], [1], [0, 0, 1, 1], [], []>} : vector<2x32xf32>, vector<32x128xf32>, vector<2x128xf32> -> vector<2x128xf32>
    %302 = arith.addf %300, %301 : vector<2x128xf32>
    %303 = arith.negf %302 : vector<2x128xf32>
    %304 = math.exp %303 : vector<2x128xf32>
    %cst_56 = arith.constant 1.000000e+00 : f32
    %305 = vector.broadcast %cst_56 : f32 to vector<2x128xf32>
    %306 = arith.addf %305, %304 : vector<2x128xf32>
    %307 = arith.divf %305, %306 : vector<2x128xf32>
    %308 = vector.extract_strided_slice %307 {offsets = [0, 0], sizes = [2, 32], strides = [1, 1]} : vector<2x128xf32> to vector<2x32xf32>
    %309 = vector.extract_strided_slice %307 {offsets = [0, 32], sizes = [2, 32], strides = [1, 1]} : vector<2x128xf32> to vector<2x32xf32>
    %310 = vector.extract_strided_slice %307 {offsets = [0, 96], sizes = [2, 32], strides = [1, 1]} : vector<2x128xf32> to vector<2x32xf32>
    %311 = vector.extract_strided_slice %302 {offsets = [0, 64], sizes = [2, 32], strides = [1, 1]} : vector<2x128xf32> to vector<2x32xf32>
    %312 = math.tanh %311 : vector<2x32xf32>
    %313 = arith.mulf %309, %295 : vector<2x32xf32>
    %314 = arith.mulf %308, %312 : vector<2x32xf32>
    %315 = arith.addf %313, %314 : vector<2x32xf32>
    %316 = math.tanh %315 : vector<2x32xf32>
    %317 = arith.mulf %310, %316 : vector<2x32xf32>
    %c0_57 = arith.constant 0 : index
    %c0_58 = arith.constant 0 : index
    %318 = vector.load %arg7[%c0_57, %c0_58] : memref<32x1xf32, #tpu.memory_space<vmem>>, vector<32x1xf32>
    %cst_59 = arith.constant dense<0.000000e+00> : vector<2x1xf32>
    %319 = tpu.matmul %317, %318, %cst_59 {dimension_numbers = #tpu.dot_dimension_numbers<[1], [0], [0], [1], [0, 0, 1, 1], [], []>} : vector<2x32xf32>, vector<32x1xf32>, vector<2x1xf32> -> vector<2x1xf32>
    %c0_60 = arith.constant 0 : index
    %c0_61 = arith.constant 0 : index
    %320 = vector.load %arg8[%c0_60, %c0_61] : memref<1x1xf32, #tpu.memory_space<vmem>>, vector<1x1xf32>
    %321 = vector.broadcast %320 : vector<1x1xf32> to vector<2x1xf32>
    %322 = arith.addf %319, %321 : vector<2x1xf32>
    %323 = arith.negf %322 : vector<2x1xf32>
    %324 = math.exp %323 : vector<2x1xf32>
    %cst_62 = arith.constant 1.000000e+00 : f32
    %325 = vector.broadcast %cst_62 : f32 to vector<2x1xf32>
    %326 = arith.addf %325, %324 : vector<2x1xf32>
    %327 = arith.divf %325, %326 : vector<2x1xf32>
    %c0_63 = arith.constant 0 : index
    %c0_64 = arith.constant 0 : index
    %328 = vector.load %arg9[%c0_63, %c0_64] : memref<2x1xf32, #tpu.memory_space<vmem>>, vector<2x1xf32>
    tpu.vector_store %arg9[%c0_63, %c0_64], %327 {strides = array<i32>} : memref<2x1xf32, #tpu.memory_space<vmem>>, vector<2x1xf32>,
    return
  }
}

</mosaic_0001>

<bundles_post_ra>
// kernel: tpu_custom_call.1
= control target key start
LH: loop header
LB: loop body
LE: loop exit
PB: predicated region body
PF: predicated region fallthrough
CT: control target
= control target key end

     0   :  { %s3884_s0 = inlined_call_operand.hbm [shape: f32[16,32], index: 0, kind: input, shape index: {}]   ;;  %s3885_s1 = inlined_call_operand.vmem [shape: f32[32,128], index: 1, kind: input, shape index: {}]   ;;  %s3886_s2 = inlined_call_operand.hbm [shape: f32[32,128], index: 2, kind: input, shape index: {}]   ;;  %s3887_s3 = inlined_call_operand.vmem [shape: f32[1,128], index: 3, kind: input, shape index: {}]   ;;  %s3888_s4 = inlined_call_operand.hbm [shape: f32[32,128], index: 4, kind: input, shape index: {}]   ;;  %s3889_s5 = inlined_call_operand.hbm [shape: f32[32,128], index: 5, kind: input, shape index: {}]   ;;  %s3890_s6 = inlined_call_operand.vmem [shape: f32[1,128], index: 6, kind: input, shape index: {}]   ;;  %s3891_s7 = inlined_call_operand.vmem [shape: f32[32,1], index: 7, kind: input, shape index: {}]   ;;  %s3892_s8 = inlined_call_operand.<no memory space> [shape: f32[1,1], index: 8, kind: input, shape index: {}]   ;;  %s3893_s9 = inlined_call_operand.vmem [shape: f32[2,1], index: 9, kind: output, shape index: {}]  }
   0x1   :  { %v14_v0 = vstv %s3892_s8 }
   0x2   :  { %15 = vst [vmem:[#allocation2] sm:$0x1] %v14_v0 }
   0x3   :  { %16 = vsyncpa [#allocation4], 0 }
   0x4   :  { %17 = vsyncpa [#allocation6], 0 }
   0x5   :  { %18 = vsyncpa [#allocation9], 0  ;;  %s3388_s11 = smov [#allocation5]   ;;  %s3389_s13 = smov [#allocation3]  }
   0x6   :  { %s38_s12 = sshll.u32 %s3388_s11, 4  ;;  %s24_s14 = sshll.u32 %s3389_s13, 4  ;;  %s39_s12 = int_to_ptr.vmem [resolvable:$true] %s38_s12  ;;  %s3452_s14 = int_to_ptr.vmem [resolvable:$true] %s24_s14 }
   0x7   :  { %s3294_s17 = scalar_lea.hbm %s3886_s2, 512 }
   0x8   :  { %p3295_p0 = scmp.ne.s32.totalorder %s3886_s2, %s3294_s17  ;;  %p3298_p1 = scmp.lt.u32.totalorder %s3294_s17, %s3886_s2 }
   0xa   :  { %p3300_p2 = pnand %p3298_p1, %p3295_p0 }
   0xc   :  { %3303 = shalt.err (!%p3300_p2)
}
   0xd   :  { %s3304_s21 = scalar_lea.vmem %s39_s12, 512  ;;  %p3309_p4 = scmp.lt.s32.totalorder %s39_s12, %s39_s12 }
   0xe   :  { %p3305_p3 = scmp.ne.s32.totalorder %s39_s12, %s3304_s21  ;;  %p3310_p5 = scmp.lt.s32.totalorder %s3304_s21, %s3304_s21 }
  0x10   :  { %p3311_p6 = por %p3310_p5, %p3309_p4 }
  0x12   :  { %p3312_p7 = pnand %p3311_p6, %p3305_p3 }
  0x14   :  { %3315 = shalt.err (!%p3312_p7)
}
  0x15   :  { %s3390_s22 = smov 128   ;;  %s3391_s23 = smov 8  }
  0x16   :  { %44 = dma.hbm_to_vmem [thread:$0]  %s3886_s2, 512, %s39_s12, [#allocation6], %s3390_s22, %s3390_s22, %s3391_s23  }
  0x17   :  { %s3316_s28 = scalar_lea.hbm %s3884_s0, 256 }
  0x18   :  { %p3317_p8 = scmp.ne.s32.totalorder %s3884_s0, %s3316_s28  ;;  %p3320_p9 = scmp.lt.u32.totalorder %s3316_s28, %s3884_s0 }
  0x1a   :  { %p3322_p10 = pnand %p3320_p9, %p3317_p8 }
  0x1c   :  { %3325 = shalt.err (!%p3322_p10)
}
  0x1d   :  { %s3326_s13 = scalar_lea.vmem %s3452_s14, 256  ;;  %p3331_p12 = scmp.lt.s32.totalorder %s3452_s14, %s3452_s14 }
  0x1e   :  { %p3327_p11 = scmp.ne.s32.totalorder %s3452_s14, %s3326_s13  ;;  %p3332_p13 = scmp.lt.s32.totalorder %s3326_s13, %s3326_s13 }
  0x20   :  { %p3333_p0 = por %p3332_p13, %p3331_p12 }
  0x22   :  { %p3334_p1 = pnand %p3333_p0, %p3327_p11 }
  0x24   :  { %3337 = shalt.err (!%p3334_p1)
}
  0x25   :  { %30 = dma.hbm_to_vmem [thread:$0]  %s3884_s0, 256, %s3452_s14, [#allocation4], %s3390_s22, %s3390_s22, %s3391_s23  }
  0x26   :  { %s3392_s15 = smov [#allocation7]   ;;  %s3393_s17 = smov [#allocation8]  }
  0x27   :  { %s52_s16 = sshll.u32 %s3392_s15, 4  ;;  %s64_s18 = sshll.u32 %s3393_s17, 4  ;;  %s53_s16 = int_to_ptr.vmem [resolvable:$true] %s52_s16  ;;  %s3489_s18 = int_to_ptr.vmem [resolvable:$true] %s64_s18 }
  0x28   :  { %s3338_s20 = scalar_lea.hbm %s3888_s4, 512 }
  0x29   :  { %p3339_p2 = scmp.ne.s32.totalorder %s3888_s4, %s3338_s20  ;;  %p3342_p3 = scmp.lt.u32.totalorder %s3338_s20, %s3888_s4 }
  0x2b   :  { %p3344_p4 = pnand %p3342_p3, %p3339_p2 }
  0x2d   :  { %3347 = shalt.err (!%p3344_p4)
}
  0x2e   :  { %s3348_s0 = scalar_lea.vmem %s53_s16, 512  ;;  %p3353_p6 = scmp.lt.s32.totalorder %s53_s16, %s53_s16 }
  0x2f   :  { %p3349_p5 = scmp.ne.s32.totalorder %s53_s16, %s3348_s0  ;;  %p3354_p7 = scmp.lt.s32.totalorder %s3348_s0, %s3348_s0 }
  0x31   :  { %p3355_p8 = por %p3354_p7, %p3353_p6 }
  0x33   :  { %p3356_p9 = pnand %p3355_p8, %p3349_p5 }
  0x35   :  { %3359 = shalt.err (!%p3356_p9)
}
  0x36   :  { %58 = dma.hbm_to_vmem [thread:$0]  %s3888_s4, 512, %s53_s16, [#allocation6], %s3390_s22, %s3390_s22, %s3391_s23  }
  0x37   :  { %s3360_s30 = scalar_lea.hbm %s3889_s5, 512 }
  0x38   :  { %p3361_p10 = scmp.ne.s32.totalorder %s3889_s5, %s3360_s30  ;;  %p3364_p11 = scmp.lt.u32.totalorder %s3360_s30, %s3889_s5 }
  0x3a   :  { %p3366_p12 = pnand %p3364_p11, %p3361_p10 }
  0x3c   :  { %3369 = shalt.err (!%p3366_p12)
}
  0x3d   :  { %s3370_s12 = scalar_lea.vmem %s3489_s18, 512  ;;  %p3375_p0 = scmp.lt.s32.totalorder %s3489_s18, %s3489_s18 }
  0x3e   :  { %p3371_p13 = scmp.ne.s32.totalorder %s3489_s18, %s3370_s12  ;;  %p3376_p1 = scmp.lt.s32.totalorder %s3370_s12, %s3370_s12 }
  0x40   :  { %p3377_p2 = por %p3376_p1, %p3375_p0 }
  0x42   :  { %p3378_p3 = pnand %p3377_p2, %p3371_p13 }
  0x44   :  { %3381 = shalt.err (!%p3378_p3)
}
  0x45   :  { %70 = dma.hbm_to_vmem [thread:$0]  %s3889_s5, 512, %s3489_s18, [#allocation9], %s3390_s22, %s3390_s22, %s3391_s23  }
  0x46   :  { %3382 = dma.done.wait [#allocation4], 256  }
  0x47   :  { %3383 = vsyncadd [#allocation4], 4294967040 }
  0x48   :  { %3384 = dma.done.wait [#allocation6], 1024  }
  0x49   :  { %3385 = vsyncadd [#allocation6], 4294966272 }
  0x4a   :  { %3386 = dma.done.wait [#allocation9], 512  }
  0x4b   :  { %3387 = vsyncadd [#allocation9], 4294966784  ;;  %v3394_v1 = vmov 0.0|0.0   ;;  %vm3395_vm0 = vmmov 0   ;;  %v3396_v2 = vmov 0.0   ;;  %v89_v3 = vld [vmem:[%s3885_s1] sm:$0xff] }
  0x4c   :  { %2977 = vmatprep.subr.bf16.mxu1 %v3394_v1  ;;  %2702 = vmatprep.mubr.msk.f32.mxu1 %vm3395_vm0, %v3396_v2  ;;  %v90_v4 = vld [vmem:[%s3885_s1 + $0x8] sm:$0xff]  ;;  %v97_v5 = vld [vmem:[#allocation5] sm:$0xff]  ;;  %vm115_vm1 = vcmask 261120   ;;  %v98_v7 = vld [vmem:[#allocation5 + $0x8] sm:$0xff]  ;;  %s3397_s21 = smov 64   ;;  %vm2498_vm2 = vcmask 1024  }
  0x4d   :  { %v2969_v6 = vpack.c.bf16 %v90_v4, %v89_v3  ;;  %v91_v8 = vld [vmem:[%s3885_s1 + $0x10] sm:$0xff]  ;;  %v92_v9 = vld [vmem:[%s3885_s1 + $0x18] sm:$0xff]  ;;  %v3541_v10 = vpack.c.bf16 %v98_v7, %v97_v5  ;;  %v107_v12 = vld [vmem:[#allocation3] sm:$0xff] }
  0x4e   :  { %v2973_v11 = vpack.c.bf16 %v92_v9, %v91_v8  ;;  %v99_v13 = vld [vmem:[#allocation5 + $0x10] sm:$0xff]  ;;  %v100_v14 = vld [vmem:[#allocation5 + $0x18] sm:$0xff]  ;;  %2691 = vmatprep.mubr.msk.f32.mxu0 %vm115_vm1, %v107_v12  ;;  %v2507_v17 = vld [vmem:[%s3887_s3] ss:$0 sm:$0xff]  ;;  %s3398_s3 = smov 32  }
  0x4f   :  { %2970 = vmatprep.subr.bf16.mxu0 %v2969_v6  ;;  %2979 = vmatpush3.bf16.msra.mxu1 %v3541_v10  ;;  %v3545_v15 = vpack.c.bf16 %v100_v14, %v99_v13  ;;  %v108_v16 = vld [vmem:[#allocation3 + $0x8] sm:$0xff]  ;;  %v93_v35 = vld [vmem:[#allocation7] sm:$0xff]  ;;  %v94_v36 = vld [vmem:[#allocation7 + $0x8] sm:$0xff] }
  0x50   :  { %2972 = vmatpush3.bf16.msra.mxu0 %v2969_v6  ;;  %2980 = vmatprep.subr.bf16.mxu1 %v3394_v1  ;;  %v95_v37 = vld [vmem:[#allocation7 + $0x10] sm:$0xff]  ;;  %v3574_v38 = vpack.c.bf16 %v94_v36, %v93_v35  ;;  %v96_v39 = vld [vmem:[#allocation7 + $0x18] sm:$0xff]  ;;  %v101_v44 = vld [vmem:[#allocation8] sm:$0xff] }
  0x51   :  { %2974 = vmatprep.subr.bf16.mxu0 %v2973_v11  ;;  %v3577_v40 = vpack.c.bf16 %v96_v39, %v95_v37  ;;  %v102_v45 = vld [vmem:[#allocation8 + $0x8] sm:$0xff]  ;;  %v103_v47 = vld [vmem:[#allocation8 + $0x10] sm:$0xff]  ;;  %v104_v48 = vld [vmem:[#allocation8 + $0x18] sm:$0xff] }
  0x52   :  { %v3584_v46 = vpack.c.bf16 %v102_v45, %v101_v44  ;;  %v3589_v50 = vpack.c.bf16 %v104_v48, %v103_v47  ;;  %v3613_v55 = vld [vmem:[%s3890_s6] ss:$0 sm:$0xff] }
  0x53   :  { %2982 = vmatpush3.bf16.msra.mxu1 %v3545_v15 }
  0x54   :  { %2976 = vmatpush3.bf16.msra.mxu0 %v2973_v11  ;;  %2989 = vmatprep.subr.bf16.mxu1 %v3394_v1 }
  0x55   :  { %2983 = vmatprep.subr.bf16.mxu0 %v3394_v1 }
  0x56   :  { %2703 = vmatmul.mubr.f32.vlgmr.msra.gmra.mrb[0].mxu1 %v3396_v2 }
  0x57   :  { %2692 = vmatmul.mubr.msk.f32.vlgmr.msra.gmra.mrb[0].mxu0 %vm115_vm1, %v108_v16  ;;  %2724 = vmatprep.mubr.msk.f32.mxu1 %vm3395_vm0, %v3396_v2 }
  0x58   :  { %2985 = vmatpush3.bf16.msra.mxu0 %v3541_v10  ;;  %2713 = vmatprep.mubr.msk.f32.mxu0 %vm3395_vm0, %v3396_v2 }
  0x59   :  { %2986 = vmatprep.subr.bf16.mxu0 %v3394_v1  ;;  %2991 = vmatpush3.bf16.msra.mxu1 %v3574_v38 }
  0x5a   :  { %2992 = vmatprep.subr.bf16.mxu1 %v3394_v1 }
  0x5c   :  { %2988 = vmatpush3.bf16.msra.mxu0 %v3545_v15 }
  0x5d   :  { %3001 = vmatprep.subr.bf16.mxu0 %v3394_v1  ;;  %2994 = vmatpush3.bf16.msra.mxu1 %v3577_v40 }
  0x5e   :  { %2995 = vmatprep.subr.bf16.mxu1 %v3394_v1 }
 0x129   :  { %v266_v19 = vpop.f32.mrb[0].mxu1 }
 0x12a   :  { %v2693_v18 = vpop.f32.mrb[0].mxu0  ;;  %v2704_v22 = vpop.f32.mrb[1].mxu1 }
 0x12b   :  { %v3564_v20 = vadd.f32 %v2693_v18, %v2507_v17  ;;  %v188_v21 = vpop.f32.mrb[1].mxu0 }
 0x12c   :  { %v3566_v23 = vadd.f32 %v2507_v17, %v188_v21 }
 0x12e   :  { %v270_v24 = vadd.f32 %v266_v19, %v3566_v23 }
 0x130   :  { %3162 = vtanh.f32 %v270_v24  ;;  %v2510_v26 = vmul.f32 -1.442695, %v270_v24 }
 0x132   :  { %3164 = vpow2.f32 %v2510_v26 }
 0x13a   :  { %v3163_v25 = vpop.eup %3162 }
 0x13b   :  { %280 = vrot.lane.b32.xlu0 %v3163_v25, %s3397_s21 }
 0x13c   :  { %v3165_v27 = vpop.eup %3164 }
 0x13d   :  { %v274_v28 = vadd.f32 1.0, %v3165_v27 }
 0x13f   :  { %3166 = vrcp.f32 %v274_v28 }
 0x149   :  { %v3167_v29 = vpop.eup %3166 }
 0x14a   :  { %v278_v32 = vmul.f32 0.0, %v3167_v29 }
 0x1ad   :  { %v281_v30 = vpop.permute.xlu0 %280 }
 0x1ae   :  { %v283_v31 = vmul.f32 %v3167_v29, %v281_v30 }
 0x1b0   :  { %285 = vrot.lane.b32.xlu0 %v283_v31, %s3398_s3 }
 0x222   :  { %v286_v33 = vpop.permute.xlu0 %285 }
 0x223   :  { %v3571_v34 = vadd.f32 %v286_v33, %v278_v32 }
 0x225   :  { %3168 = vtanh.f32 %v3571_v34  ;;  %v382_v12 = vrot.slane %v3571_v34, 6 }
 0x22f   :  { %v3169_v41 = vpop.eup %3168 }
 0x230   :  { %291 = vrot.lane.b32.xlu1 %v3169_v41, %s3397_s21 }
 0x2a2   :  { %v292_v42 = vpop.permute.xlu1 %291 }
 0x2a3   :  { %v294_v43 = vmul.f32 %v3167_v29, %v292_v42 }
 0x2a5   :  { %296 = vrot.lane.b32.xlu1 %v294_v43, %s3398_s3 }
 0x317   :  { %v297_v49 = vpop.permute.xlu1 %296 }
 0x318   :  { %2714 = vmatmul.mubr.msk.f32.vlgmr.msra.gmra.mrb[2].mxu0 %vm115_vm1, %v297_v49  ;;  %2725 = vmatmul.mubr.msk.f32.vlgmr.msra.gmra.mrb[2].mxu1 %vm115_vm1, %v297_v49 }
 0x319   :  { %2997 = vmatpush3.bf16.msra.mxu1 %v3584_v46  ;;  %2735 = vmatprep.mubr.msk.f32.mxu1 %vm3395_vm0, %v3396_v2 }
 0x31a   :  { %2998 = vmatprep.subr.bf16.mxu1 %v3394_v1  ;;  %3003 = vmatpush3.bf16.msra.mxu0 %v3541_v10 }
 0x31b   :  { %3004 = vmatprep.subr.bf16.mxu0 %v3394_v1  ;;  %2746 = vmatprep.mubr.msk.f32.mxu0 %vm3395_vm0, %v3396_v2 }
 0x31d   :  { %3000 = vmatpush3.bf16.msra.mxu1 %v3589_v50 }
 0x31e   :  { %3006 = vmatpush3.bf16.msra.mxu0 %v3545_v15  ;;  %3019 = vmatprep.subr.bf16.mxu1 %v3394_v1 }
 0x31f   :  { %3007 = vmatprep.subr.bf16.mxu0 %v3394_v1 }
 0x320   :  { %2736 = vmatmul.mubr.f32.vlgmr.msra.gmra.mrb[2].mxu1 %v3396_v2 }
 0x321   :  { %3021 = vmatpush3.bf16.msra.mxu1 %v3541_v10  ;;  %2779 = vmatprep.mubr.msk.f32.mxu1 %vm3395_vm0, %v3396_v2 }
 0x322   :  { %3022 = vmatprep.subr.bf16.mxu1 %v3394_v1 }
 0x325   :  { %3024 = vmatpush3.bf16.msra.mxu1 %v3545_v15 }
 0x326   :  { %3025 = vmatprep.subr.bf16.mxu1 %v3394_v1 }
 0x3eb   :  { %v366_v51 = vpop.f32.mrb[2].mxu0 }
 0x3ec   :  { %v371_v52 = vrot.slane %v366_v51, 6  ;;  %v2715_v53 = vpop.f32.mrb[3].mxu0 }
 0x3ee   :  { %v373_v54 = vadd.f32 %v371_v52, %v3566_v23 }
 0x3f0   :  { %3170 = vtanh.f32 %v373_v54  ;;  %v2512_v61 = vmul.f32 -1.442695, %v373_v54 }
 0x3f3   :  { %v543_v56 = vpop.f32.mrb[2].mxu1 }
 0x3f4   :  { %v3127_v57 = vadd.f32 %v3613_v55, %v543_v56  ;;  %v2737_v58 = vpop.f32.mrb[3].mxu1 }
 0x3f6   :  { %3172 = vtanh.f32 %v3127_v57  ;;  %v2515_v62 = vmul.f32 -1.442695, %v3127_v57 }
 0x3f7   :  { %3174 = vpow2.f32 %v2512_v61 }
 0x3f8   :  { %3176 = vpow2.f32 %v2515_v62 }
 0x3fa   :  { %v3171_v59 = vpop.eup %3170 }
 0x3fb   :  { %386 = vrot.lane.b32.xlu0 %v3171_v59, %s3397_s21 }
 0x400   :  { %v3173_v60 = vpop.eup %3172 }
 0x401   :  { %557 = vrot.lane.b32.xlu1 %v3173_v60, %s3397_s21  ;;  %v3175_v63 = vpop.eup %3174 }
 0x402   :  { %v377_v0 = vadd.f32 1.0, %v3175_v63  ;;  %v3177_v3 = vpop.eup %3176 }
 0x403   :  { %v551_v4 = vadd.f32 1.0, %v3177_v3 }
 0x404   :  { %3178 = vrcp.f32 %v377_v0 }
 0x405   :  { %3180 = vrcp.f32 %v551_v4 }
 0x40e   :  { %v3179_v5 = vpop.eup %3178 }
 0x40f   :  { %v3181_v8 = vpop.eup %3180  ;;  %v384_v13 = vmul.f32 %v3179_v5, %v382_v12 }
 0x410   :  { %v555_v17 = vmul.f32 0.0, %v3181_v8 }
 0x46d   :  { %v387_v6 = vpop.permute.xlu0 %386 }
 0x46e   :  { %v389_v7 = vmul.f32 %v3179_v5, %v387_v6 }
 0x470   :  { %391 = vrot.lane.b32.xlu0 %v389_v7, %s3398_s3 }
 0x473   :  { %v558_v9 = vpop.permute.xlu1 %557 }
 0x474   :  { %v560_v11 = vmul.f32 %v3181_v8, %v558_v9 }
 0x476   :  { %562 = vrot.lane.b32.xlu1 %v560_v11, %s3398_s3 }
 0x4e2   :  { %v392_v14 = vpop.permute.xlu0 %391 }
 0x4e3   :  { %v3621_v16 = vadd.f32 %v392_v14, %v384_v13 }
 0x4e5   :  { %3182 = vtanh.f32 %v3621_v16  ;;  %v660_v57 = vrot.slane %v3621_v16, 6 }
 0x4e8   :  { %v563_v18 = vpop.permute.xlu1 %562 }
 0x4e9   :  { %v3624_v19 = vadd.f32 %v563_v18, %v555_v17 }
 0x4eb   :  { %3184 = vtanh.f32 %v3624_v19 }
 0x4ef   :  { %v3183_v21 = vpop.eup %3182 }
 0x4f0   :  { %397 = vrot.lane.b32.xlu0 %v3183_v21, %s3397_s21 }
 0x4f5   :  { %v3185_v22 = vpop.eup %3184 }
 0x4f6   :  { %568 = vrot.lane.b32.xlu1 %v3185_v22, %s3397_s21 }
 0x562   :  { %v398_v24 = vpop.permute.xlu0 %397 }
 0x563   :  { %v400_v25 = vmul.f32 %v3179_v5, %v398_v24 }
 0x565   :  { %v573_v26 = vrot.slane %v400_v25, 2 }
 0x567   :  { %574 = vrot.lane.b32.xlu0 %v573_v26, %s3398_s3 }
 0x568   :  { %v569_v27 = vpop.permute.xlu1 %568 }
 0x569   :  { %v571_v28 = vmul.f32 %v3181_v8, %v569_v27 }
 0x56b   :  { %750 = vrot.lane.b32.xlu1 %v571_v28, %s3398_s3 }
 0x5d9   :  { %v575_v29 = vpop.permute.xlu0 %574 }
 0x5da   :  { %2747 = vmatmul.mubr.msk.f32.vlgmr.msra.gmra.mrb[4].mxu0 %vm115_vm1, %v575_v29 }
 0x5db   :  { %3009 = vmatpush3.bf16.msra.mxu0 %v3574_v38  ;;  %2757 = vmatprep.mubr.msk.f32.mxu0 %vm3395_vm0, %v3396_v2 }
 0x5dc   :  { %3010 = vmatprep.subr.bf16.mxu0 %v3394_v1 }
 0x5dd   :  { %v751_v30 = vpop.permute.xlu1 %750 }
 0x5df   :  { %3012 = vmatpush3.bf16.msra.mxu0 %v3577_v40 }
 0x5e0   :  { %3013 = vmatprep.subr.bf16.mxu0 %v3394_v1 }
 0x5e2   :  { %2758 = vmatmul.mubr.msk.f32.vlgmr.msra.gmra.mrb[6].mxu0 %vm115_vm1, %v575_v29 }
 0x5e3   :  { %3015 = vmatpush3.bf16.msra.mxu0 %v3584_v46  ;;  %2768 = vmatprep.mubr.msk.f32.mxu0 %vm3395_vm0, %v3396_v2 }
 0x5e4   :  { %3016 = vmatprep.subr.bf16.mxu0 %v3394_v1 }
 0x5e7   :  { %3018 = vmatpush3.bf16.msra.mxu0 %v3589_v50 }
 0x5e8   :  { %3037 = vmatprep.subr.bf16.mxu0 %v3394_v1 }
 0x5ea   :  { %2769 = vmatmul.mubr.msk.f32.vlgmr.msra.gmra.mrb[6].mxu0 %vm115_vm1, %v751_v30 }
 0x5eb   :  { %3039 = vmatpush3.bf16.msra.mxu0 %v3541_v10  ;;  %2812 = vmatprep.mubr.msk.f32.mxu0 %vm3395_vm0, %v3396_v2 }
 0x5ec   :  { %3040 = vmatprep.subr.bf16.mxu0 %v3394_v1 }
 0x5ef   :  { %3042 = vmatpush3.bf16.msra.mxu0 %v3545_v15 }
 0x5f0   :  { %3043 = vmatprep.subr.bf16.mxu0 %v3394_v1 }
 0x6ad   :  { %v644_v31 = vpop.f32.mrb[4].mxu0 }
 0x6ae   :  { %v649_v32 = vrot.slane %v644_v31, 4  ;;  %v2748_v33 = vpop.f32.mrb[5].mxu0 }
 0x6b0   :  { %v651_v34 = vadd.f32 %v649_v32, %v3566_v23 }
 0x6b2   :  { %3186 = vtanh.f32 %v651_v34  ;;  %v2517_v42 = vmul.f32 -1.442695, %v651_v34 }
 0x6bc   :  { %v3187_v35 = vpop.eup %3186 }
 0x6bd   :  { %v820_v36 = vpop.f32.mrb[6].mxu0  ;;  %664 = vrot.lane.b32.xlu0 %v3187_v35, %s3397_s21 }
 0x6be   :  { %v3128_v37 = vadd.f32 %v3613_v55, %v820_v36  ;;  %v2770_v39 = vpop.f32.mrb[7].mxu0 }
 0x6c0   :  { %3188 = vtanh.f32 %v3128_v37  ;;  %v2520_v44 = vmul.f32 -1.442695, %v3128_v37 }
 0x6c1   :  { %3190 = vpow2.f32 %v2517_v42 }
 0x6c2   :  { %3192 = vpow2.f32 %v2520_v44 }
 0x6ca   :  { %v3189_v41 = vpop.eup %3188 }
 0x6cb   :  { %834 = vrot.lane.b32.xlu1 %v3189_v41, %s3397_s21  ;;  %v3191_v43 = vpop.eup %3190 }
 0x6cc   :  { %v655_v45 = vadd.f32 1.0, %v3191_v43  ;;  %v3193_v47 = vpop.eup %3192 }
 0x6cd   :  { %v828_v49 = vadd.f32 1.0, %v3193_v47 }
 0x6ce   :  { %3194 = vrcp.f32 %v655_v45 }
 0x6cf   :  { %3196 = vrcp.f32 %v828_v49 }
 0x6d8   :  { %v3195_v48 = vpop.eup %3194 }
 0x6d9   :  { %v3197_v53 = vpop.eup %3196  ;;  %v662_v58 = vmul.f32 %v3195_v48, %v660_v57 }
 0x6da   :  { %v832_v62 = vmul.f32 %v3197_v53, %v3624_v19 }
 0x72f   :  { %v665_v51 = vpop.permute.xlu0 %664 }
 0x730   :  { %v667_v52 = vmul.f32 %v3195_v48, %v665_v51 }
 0x732   :  { %669 = vrot.lane.b32.xlu0 %v667_v52, %s3398_s3 }
 0x73d   :  { %v835_v54 = vpop.permute.xlu1 %834 }
 0x73e   :  { %v837_v56 = vmul.f32 %v3197_v53, %v835_v54 }
 0x740   :  { %839 = vrot.lane.b32.xlu1 %v837_v56, %s3398_s3 }
 0x7a4   :  { %v670_v59 = vpop.permute.xlu0 %669 }
 0x7a5   :  { %v3659_v60 = vadd.f32 %v670_v59, %v662_v58 }
 0x7a7   :  { %3198 = vtanh.f32 %v3659_v60  ;;  %v937_v35 = vrot.slane %v3659_v60, 6 }
 0x7b1   :  { %v3199_v61 = vpop.eup %3198 }
 0x7b2   :  { %v840_v63 = vpop.permute.xlu1 %839  ;;  %675 = vrot.lane.b32.xlu0 %v3199_v61, %s3397_s21 }
 0x7b3   :  { %v3664_v0 = vadd.f32 %v840_v63, %v832_v62 }
 0x7b5   :  { %3200 = vtanh.f32 %v3664_v0 }
 0x7bf   :  { %v3201_v3 = vpop.eup %3200 }
 0x7c0   :  { %845 = vrot.lane.b32.xlu1 %v3201_v3, %s3397_s21 }
 0x824   :  { %v676_v4 = vpop.permute.xlu0 %675 }
 0x825   :  { %v678_v5 = vmul.f32 %v3195_v48, %v676_v4 }
 0x827   :  { %v850_v6 = vrot.slane %v678_v5, 4 }
 0x829   :  { %851 = vrot.lane.b32.xlu0 %v850_v6, %s3398_s3 }
 0x832   :  { %v846_v7 = vpop.permute.xlu1 %845 }
 0x833   :  { %v848_v8 = vmul.f32 %v3197_v53, %v846_v7 }
 0x835   :  { %1027 = vrot.lane.b32.xlu1 %v848_v8, %s3398_s3 }
 0x89b   :  { %v852_v9 = vpop.permute.xlu0 %851 }
 0x89c   :  { %2780 = vmatmul.mubr.msk.f32.vlgmr.msra.gmra.mrb[4].mxu1 %vm115_vm1, %v852_v9 }
 0x89d   :  { %3027 = vmatpush3.bf16.msra.mxu1 %v3574_v38  ;;  %2790 = vmatprep.mubr.msk.f32.mxu1 %vm3395_vm0, %v3396_v2 }
 0x89e   :  { %3028 = vmatprep.subr.bf16.mxu1 %v3394_v1 }
 0x8a1   :  { %3030 = vmatpush3.bf16.msra.mxu1 %v3577_v40 }
 0x8a2   :  { %3031 = vmatprep.subr.bf16.mxu1 %v3394_v1 }
 0x8a4   :  { %2791 = vmatmul.mubr.msk.f32.vlgmr.msra.gmra.mrb[6].mxu1 %vm115_vm1, %v852_v9 }
 0x8a5   :  { %3033 = vmatpush3.bf16.msra.mxu1 %v3584_v46  ;;  %2801 = vmatprep.mubr.msk.f32.mxu1 %vm3395_vm0, %v3396_v2 }
 0x8a6   :  { %3034 = vmatprep.subr.bf16.mxu1 %v3394_v1 }
 0x8a7   :  { %v1028_v11 = vpop.permute.xlu1 %1027 }
 0x8a9   :  { %3036 = vmatpush3.bf16.msra.mxu1 %v3589_v50 }
 0x8aa   :  { %3055 = vmatprep.subr.bf16.mxu1 %v3394_v1 }
 0x8ac   :  { %2802 = vmatmul.mubr.msk.f32.vlgmr.msra.gmra.mrb[6].mxu1 %vm115_vm1, %v1028_v11 }
 0x8ad   :  { %3057 = vmatpush3.bf16.msra.mxu1 %v3541_v10  ;;  %2845 = vmatprep.mubr.msk.f32.mxu1 %vm3395_vm0, %v3396_v2 }
 0x8ae   :  { %3058 = vmatprep.subr.bf16.mxu1 %v3394_v1 }
 0x8b1   :  { %3060 = vmatpush3.bf16.msra.mxu1 %v3545_v15 }
 0x8b2   :  { %3061 = vmatprep.subr.bf16.mxu1 %v3394_v1 }
 0x96f   :  { %v921_v12 = vpop.f32.mrb[4].mxu1 }
 0x970   :  { %v926_v13 = vrot.slane %v921_v12, 2  ;;  %v2781_v14 = vpop.f32.mrb[5].mxu1 }
 0x972   :  { %v928_v16 = vadd.f32 %v926_v13, %v3566_v23 }
 0x974   :  { %3202 = vtanh.f32 %v928_v16  ;;  %v2522_v24 = vmul.f32 -1.442695, %v928_v16 }
 0x97e   :  { %v3203_v17 = vpop.eup %3202 }
 0x97f   :  { %v1097_v18 = vpop.f32.mrb[6].mxu1  ;;  %941 = vrot.lane.b32.xlu0 %v3203_v17, %s3397_s21 }
 0x980   :  { %v3129_v19 = vadd.f32 %v3613_v55, %v1097_v18  ;;  %v2803_v21 = vpop.f32.mrb[7].mxu1 }
 0x982   :  { %3204 = vtanh.f32 %v3129_v19  ;;  %v2525_v26 = vmul.f32 -1.442695, %v3129_v19 }
 0x983   :  { %3206 = vpow2.f32 %v2522_v24 }
 0x984   :  { %3208 = vpow2.f32 %v2525_v26 }
 0x98c   :  { %v3205_v22 = vpop.eup %3204 }
 0x98d   :  { %1111 = vrot.lane.b32.xlu1 %v3205_v22, %s3397_s21  ;;  %v3207_v25 = vpop.eup %3206 }
 0x98e   :  { %v932_v27 = vadd.f32 1.0, %v3207_v25  ;;  %v3209_v23 = vpop.eup %3208 }
 0x98f   :  { %v1105_v29 = vadd.f32 1.0, %v3209_v23 }
 0x990   :  { %3210 = vrcp.f32 %v932_v27 }
 0x991   :  { %3212 = vrcp.f32 %v1105_v29 }
 0x99a   :  { %v3211_v28 = vpop.eup %3210 }
 0x99b   :  { %v3213_v32 = vpop.eup %3212  ;;  %v939_v36 = vmul.f32 %v3211_v28, %v937_v35 }
 0x99c   :  { %v1109_v42 = vmul.f32 %v3213_v32, %v3664_v0 }
 0x9f1   :  { %v942_v30 = vpop.permute.xlu0 %941 }
 0x9f2   :  { %v944_v31 = vmul.f32 %v3211_v28, %v942_v30 }
 0x9f4   :  { %946 = vrot.lane.b32.xlu0 %v944_v31, %s3398_s3 }
 0x9ff   :  { %v1112_v33 = vpop.permute.xlu1 %1111 }
 0xa00   :  { %v1114_v34 = vmul.f32 %v3213_v32, %v1112_v33 }
 0xa02   :  { %1116 = vrot.lane.b32.xlu1 %v1114_v34, %s3398_s3 }
 0xa66   :  { %v947_v37 = vpop.permute.xlu0 %946 }
 0xa67   :  { %v3698_v39 = vadd.f32 %v947_v37, %v939_v36 }
 0xa69   :  { %3214 = vtanh.f32 %v3698_v39  ;;  %v1211_v16 = vrot.slane %v3698_v39, 6 }
 0xa73   :  { %v3215_v41 = vpop.eup %3214 }
 0xa74   :  { %v1117_v43 = vpop.permute.xlu1 %1116  ;;  %952 = vrot.lane.b32.xlu0 %v3215_v41, %s3397_s21 }
 0xa75   :  { %v3703_v44 = vadd.f32 %v1117_v43, %v1109_v42 }
 0xa77   :  { %3216 = vtanh.f32 %v3703_v44 }
 0xa81   :  { %v3217_v45 = vpop.eup %3216 }
 0xa82   :  { %1122 = vrot.lane.b32.xlu1 %v3217_v45, %s3397_s21 }
 0xae6   :  { %v953_v47 = vpop.permute.xlu0 %952 }
 0xae7   :  { %v955_v48 = vmul.f32 %v3211_v28, %v953_v47 }
 0xae9   :  { %v1127_v49 = vrot.slane %v955_v48, 6 }
 0xaeb   :  { %1128 = vrot.lane.b32.xlu0 %v1127_v49, %s3398_s3 }
 0xaf4   :  { %v1123_v51 = vpop.permute.xlu1 %1122 }
 0xaf5   :  { %v1125_v52 = vmul.f32 %v3213_v32, %v1123_v51 }
 0xaf7   :  { %1301 = vrot.lane.b32.xlu1 %v1125_v52, %s3398_s3 }
 0xb5d   :  { %v1129_v53 = vpop.permute.xlu0 %1128 }
 0xb5e   :  { %2813 = vmatmul.mubr.msk.f32.vlgmr.msra.gmra.mrb[8].mxu0 %vm115_vm1, %v1129_v53 }
 0xb5f   :  { %3045 = vmatpush3.bf16.msra.mxu0 %v3574_v38  ;;  %2823 = vmatprep.mubr.msk.f32.mxu0 %vm3395_vm0, %v3396_v2 }
 0xb60   :  { %3046 = vmatprep.subr.bf16.mxu0 %v3394_v1 }
 0xb63   :  { %3048 = vmatpush3.bf16.msra.mxu0 %v3577_v40 }
 0xb64   :  { %3049 = vmatprep.subr.bf16.mxu0 %v3394_v1 }
 0xb66   :  { %2824 = vmatmul.mubr.msk.f32.vlgmr.msra.gmra.mrb[10].mxu0 %vm115_vm1, %v1129_v53 }
 0xb67   :  { %3051 = vmatpush3.bf16.msra.mxu0 %v3584_v46  ;;  %2834 = vmatprep.mubr.msk.f32.mxu0 %vm3395_vm0, %v3396_v2 }
 0xb68   :  { %3052 = vmatprep.subr.bf16.mxu0 %v3394_v1 }
 0xb69   :  { %v1302_v54 = vpop.permute.xlu1 %1301 }
 0xb6b   :  { %3054 = vmatpush3.bf16.msra.mxu0 %v3589_v50 }
 0xb6c   :  { %3073 = vmatprep.subr.bf16.mxu0 %v3394_v1 }
 0xb6e   :  { %2835 = vmatmul.mubr.msk.f32.vlgmr.msra.gmra.mrb[10].mxu0 %vm115_vm1, %v1302_v54 }
 0xb6f   :  { %3075 = vmatpush3.bf16.msra.mxu0 %v3541_v10  ;;  %2878 = vmatprep.mubr.msk.f32.mxu0 %vm3395_vm0, %v3396_v2 }
 0xb70   :  { %3076 = vmatprep.subr.bf16.mxu0 %v3394_v1 }
 0xb73   :  { %3078 = vmatpush3.bf16.msra.mxu0 %v3545_v15 }
 0xb74   :  { %3079 = vmatprep.subr.bf16.mxu0 %v3394_v1 }
 0xc31   :  { %v1198_v56 = vpop.f32.mrb[8].mxu0 }
 0xc32   :  { %v1202_v57 = vadd.f32 %v1198_v56, %v3564_v20  ;;  %v2814_v58 = vpop.f32.mrb[9].mxu0 }
 0xc34   :  { %3218 = vtanh.f32 %v1202_v57  ;;  %v2527_v0 = vmul.f32 -1.442695, %v1202_v57 }
 0xc3e   :  { %v3219_v59 = vpop.eup %3218 }
 0xc3f   :  { %1215 = vrot.lane.b32.xlu0 %v3219_v59, %s3397_s21 }
 0xc41   :  { %v1371_v60 = vpop.f32.mrb[10].mxu0 }
 0xc42   :  { %v3130_v61 = vadd.f32 %v3613_v55, %v1371_v60  ;;  %v2836_v62 = vpop.f32.mrb[11].mxu0 }
 0xc44   :  { %3220 = vtanh.f32 %v3130_v61  ;;  %v2530_v4 = vmul.f32 -1.442695, %v3130_v61 }
 0xc45   :  { %3222 = vpow2.f32 %v2527_v0 }
 0xc46   :  { %3224 = vpow2.f32 %v2530_v4 }
 0xc4e   :  { %v3221_v63 = vpop.eup %3220 }
 0xc4f   :  { %1385 = vrot.lane.b32.xlu1 %v3221_v63, %s3397_s21  ;;  %v3223_v3 = vpop.eup %3222 }
 0xc50   :  { %v1206_v5 = vadd.f32 1.0, %v3223_v3  ;;  %v3225_v6 = vpop.eup %3224 }
 0xc51   :  { %v1379_v11 = vadd.f32 1.0, %v3225_v6 }
 0xc52   :  { %3226 = vrcp.f32 %v1206_v5 }
 0xc53   :  { %3228 = vrcp.f32 %v1379_v11 }
 0xc5c   :  { %v3227_v7 = vpop.eup %3226 }
 0xc5d   :  { %v3229_v12 = vpop.eup %3228  ;;  %v1213_v17 = vmul.f32 %v3227_v7, %v1211_v16 }
 0xc5e   :  { %v1383_v22 = vmul.f32 %v3229_v12, %v3703_v44 }
 0xcb1   :  { %v1216_v8 = vpop.permute.xlu0 %1215 }
 0xcb2   :  { %v1218_v9 = vmul.f32 %v3227_v7, %v1216_v8 }
 0xcb4   :  { %1220 = vrot.lane.b32.xlu0 %v1218_v9, %s3398_s3 }
 0xcc1   :  { %v1386_v13 = vpop.permute.xlu1 %1385 }
 0xcc2   :  { %v1388_v14 = vmul.f32 %v3229_v12, %v1386_v13 }
 0xcc4   :  { %1390 = vrot.lane.b32.xlu1 %v1388_v14, %s3398_s3 }
 0xd26   :  { %v1221_v18 = vpop.permute.xlu0 %1220 }
 0xd27   :  { %v3737_v19 = vadd.f32 %v1221_v18, %v1213_v17 }
 0xd29   :  { %3230 = vtanh.f32 %v3737_v19  ;;  %v1487_v56 = vrot.slane %v3737_v19, 6 }
 0xd33   :  { %v3231_v21 = vpop.eup %3230 }
 0xd34   :  { %1226 = vrot.lane.b32.xlu0 %v3231_v21, %s3397_s21 }
 0xd36   :  { %v1391_v24 = vpop.permute.xlu1 %1390 }
 0xd37   :  { %v3742_v25 = vadd.f32 %v1391_v24, %v1383_v22 }
 0xd39   :  { %3232 = vtanh.f32 %v3742_v25 }
 0xd43   :  { %v3233_v26 = vpop.eup %3232 }
 0xd44   :  { %1396 = vrot.lane.b32.xlu1 %v3233_v26, %s3397_s21 }
 0xda6   :  { %v1227_v27 = vpop.permute.xlu0 %1226 }
 0xda7   :  { %v1229_v23 = vmul.f32 %v3227_v7, %v1227_v27 }
 0xda9   :  { %1401 = vrot.lane.b32.xlu0 %v1229_v23, %s3398_s3 }
 0xdb6   :  { %v1397_v28 = vpop.permute.xlu1 %1396 }
 0xdb7   :  { %v1399_v29 = vmul.f32 %v3229_v12, %v1397_v28 }
 0xdb9   :  { %1577 = vrot.lane.b32.xlu1 %v1399_v29, %s3398_s3 }
 0xe1b   :  { %v1402_v30 = vpop.permute.xlu0 %1401 }
 0xe1c   :  { %2846 = vmatmul.mubr.msk.f32.vlgmr.msra.gmra.mrb[8].mxu1 %vm115_vm1, %v1402_v30 }
 0xe1d   :  { %3063 = vmatpush3.bf16.msra.mxu1 %v3574_v38  ;;  %2856 = vmatprep.mubr.msk.f32.mxu1 %vm3395_vm0, %v3396_v2 }
 0xe1e   :  { %3064 = vmatprep.subr.bf16.mxu1 %v3394_v1 }
 0xe21   :  { %3066 = vmatpush3.bf16.msra.mxu1 %v3577_v40 }
 0xe22   :  { %3067 = vmatprep.subr.bf16.mxu1 %v3394_v1 }
 0xe24   :  { %2857 = vmatmul.mubr.msk.f32.vlgmr.msra.gmra.mrb[10].mxu1 %vm115_vm1, %v1402_v30 }
 0xe25   :  { %3069 = vmatpush3.bf16.msra.mxu1 %v3584_v46  ;;  %2867 = vmatprep.mubr.msk.f32.mxu1 %vm3395_vm0, %v3396_v2 }
 0xe26   :  { %3070 = vmatprep.subr.bf16.mxu1 %v3394_v1 }
 0xe29   :  { %3072 = vmatpush3.bf16.msra.mxu1 %v3589_v50 }
 0xe2a   :  { %3091 = vmatprep.subr.bf16.mxu1 %v3394_v1 }
 0xe2b   :  { %v1578_v31 = vpop.permute.xlu1 %1577 }
 0xe2c   :  { %2868 = vmatmul.mubr.msk.f32.vlgmr.msra.gmra.mrb[10].mxu1 %vm115_vm1, %v1578_v31 }
 0xe2d   :  { %3093 = vmatpush3.bf16.msra.mxu1 %v3541_v10  ;;  %2911 = vmatprep.mubr.msk.f32.mxu1 %vm3395_vm0, %v3396_v2 }
 0xe2e   :  { %3094 = vmatprep.subr.bf16.mxu1 %v3394_v1 }
 0xe31   :  { %3096 = vmatpush3.bf16.msra.mxu1 %v3545_v15 }
 0xe32   :  { %3097 = vmatprep.subr.bf16.mxu1 %v3394_v1 }
 0xeef   :  { %v1471_v32 = vpop.f32.mrb[8].mxu1 }
 0xef0   :  { %v1476_v33 = vrot.slane %v1471_v32, 6  ;;  %v2847_v34 = vpop.f32.mrb[9].mxu1 }
 0xef2   :  { %v1478_v35 = vadd.f32 %v1476_v33, %v3564_v20 }
 0xef4   :  { %3234 = vtanh.f32 %v1478_v35  ;;  %v2532_v15 = vmul.f32 -1.442695, %v1478_v35 }
 0xefe   :  { %v3235_v36 = vpop.eup %3234 }
 0xeff   :  { %v1647_v37 = vpop.f32.mrb[10].mxu1  ;;  %1491 = vrot.lane.b32.xlu0 %v3235_v36, %s3397_s21 }
 0xf00   :  { %v3131_v10 = vadd.f32 %v3613_v55, %v1647_v37  ;;  %v2869_v39 = vpop.f32.mrb[11].mxu1 }
 0xf02   :  { %3236 = vtanh.f32 %v3131_v10  ;;  %v2535_v43 = vmul.f32 -1.442695, %v3131_v10 }
 0xf03   :  { %3238 = vpow2.f32 %v2532_v15 }
 0xf04   :  { %3240 = vpow2.f32 %v2535_v43 }
 0xf0c   :  { %v3237_v41 = vpop.eup %3236 }
 0xf0d   :  { %1661 = vrot.lane.b32.xlu1 %v3237_v41, %s3397_s21  ;;  %v3239_v42 = vpop.eup %3238 }
 0xf0e   :  { %v1482_v44 = vadd.f32 1.0, %v3239_v42  ;;  %v3241_v45 = vpop.eup %3240 }
 0xf0f   :  { %v1655_v48 = vadd.f32 1.0, %v3241_v45 }
 0xf10   :  { %3242 = vrcp.f32 %v1482_v44 }
 0xf11   :  { %3244 = vrcp.f32 %v1655_v48 }
 0xf1a   :  { %v3243_v47 = vpop.eup %3242 }
 0xf1b   :  { %v3245_v52 = vpop.eup %3244  ;;  %v1489_v57 = vmul.f32 %v3243_v47, %v1487_v56 }
 0xf1c   :  { %v1659_v61 = vmul.f32 %v3245_v52, %v3742_v25 }
 0xf71   :  { %v1492_v49 = vpop.permute.xlu0 %1491 }
 0xf72   :  { %v1494_v51 = vmul.f32 %v3243_v47, %v1492_v49 }
 0xf74   :  { %1496 = vrot.lane.b32.xlu0 %v1494_v51, %s3398_s3 }
 0xf7f   :  { %v1662_v53 = vpop.permute.xlu1 %1661 }
 0xf80   :  { %v1664_v54 = vmul.f32 %v3245_v52, %v1662_v53 }
 0xf82   :  { %1666 = vrot.lane.b32.xlu1 %v1664_v54, %s3398_s3 }
 0xfe6   :  { %v1497_v58 = vpop.permute.xlu0 %1496 }
 0xfe7   :  { %v3776_v59 = vadd.f32 %v1497_v58, %v1489_v57 }
 0xfe9   :  { %3246 = vtanh.f32 %v3776_v59  ;;  %v1764_v34 = vrot.slane %v3776_v59, 6 }
 0xff3   :  { %v3247_v60 = vpop.eup %3246 }
 0xff4   :  { %v1667_v62 = vpop.permute.xlu1 %1666  ;;  %1502 = vrot.lane.b32.xlu0 %v3247_v60, %s3397_s21 }
 0xff5   :  { %v3781_v63 = vadd.f32 %v1667_v62, %v1659_v61 }
 0xff7   :  { %3248 = vtanh.f32 %v3781_v63 }
0x1001   :  { %v3249_v0 = vpop.eup %3248 }
0x1002   :  { %1672 = vrot.lane.b32.xlu1 %v3249_v0, %s3397_s21 }
0x1066   :  { %v1503_v3 = vpop.permute.xlu0 %1502 }
0x1067   :  { %v1505_v4 = vmul.f32 %v3243_v47, %v1503_v3 }
0x1069   :  { %v1677_v5 = vrot.slane %v1505_v4, 2 }
0x106b   :  { %1678 = vrot.lane.b32.xlu0 %v1677_v5, %s3398_s3 }
0x1074   :  { %v1673_v6 = vpop.permute.xlu1 %1672 }
0x1075   :  { %v1675_v7 = vmul.f32 %v3245_v52, %v1673_v6 }
0x1077   :  { %1854 = vrot.lane.b32.xlu1 %v1675_v7, %s3398_s3 }
0x10dd   :  { %v1679_v8 = vpop.permute.xlu0 %1678 }
0x10de   :  { %2879 = vmatmul.mubr.msk.f32.vlgmr.msra.gmra.mrb[12].mxu0 %vm115_vm1, %v1679_v8 }
0x10df   :  { %3081 = vmatpush3.bf16.msra.mxu0 %v3574_v38  ;;  %2889 = vmatprep.mubr.msk.f32.mxu0 %vm3395_vm0, %v3396_v2 }
0x10e0   :  { %3082 = vmatprep.subr.bf16.mxu0 %v3394_v1 }
0x10e3   :  { %3084 = vmatpush3.bf16.msra.mxu0 %v3577_v40 }
0x10e4   :  { %3085 = vmatprep.subr.bf16.mxu0 %v3394_v1 }
0x10e6   :  { %2890 = vmatmul.mubr.msk.f32.vlgmr.msra.gmra.mrb[14].mxu0 %vm115_vm1, %v1679_v8 }
0x10e7   :  { %3087 = vmatpush3.bf16.msra.mxu0 %v3584_v46  ;;  %2900 = vmatprep.mubr.msk.f32.mxu0 %vm3395_vm0, %v3396_v2 }
0x10e8   :  { %3088 = vmatprep.subr.bf16.mxu0 %v3394_v1 }
0x10e9   :  { %v1855_v9 = vpop.permute.xlu1 %1854 }
0x10eb   :  { %3090 = vmatpush3.bf16.msra.mxu0 %v3589_v50 }
0x10ec   :  { %3109 = vmatprep.subr.bf16.mxu0 %v3394_v1 }
0x10ee   :  { %2901 = vmatmul.mubr.msk.f32.vlgmr.msra.gmra.mrb[14].mxu0 %vm115_vm1, %v1855_v9 }
0x10ef   :  { %3111 = vmatpush3.bf16.msra.mxu0 %v3574_v38  ;;  %2944 = vmatprep.mubr.msk.f32.mxu0 %vm3395_vm0, %v3396_v2 }
0x10f0   :  { %3112 = vmatprep.subr.bf16.mxu0 %v3394_v1 }
0x10f3   :  { %3114 = vmatpush3.bf16.msra.mxu0 %v3577_v40 }
0x10f4   :  { %3115 = vmatprep.subr.bf16.mxu0 %v3394_v1 }
0x11b1   :  { %v1748_v11 = vpop.f32.mrb[12].mxu0 }
0x11b2   :  { %v1753_v12 = vrot.slane %v1748_v11, 4  ;;  %v2880_v13 = vpop.f32.mrb[13].mxu0 }
0x11b4   :  { %v1755_v14 = vadd.f32 %v1753_v12, %v3564_v20 }
0x11b6   :  { %3250 = vtanh.f32 %v1755_v14  ;;  %v2537_v22 = vmul.f32 -1.442695, %v1755_v14 }
0x11c0   :  { %v3251_v16 = vpop.eup %3250 }
0x11c1   :  { %v1924_v17 = vpop.f32.mrb[14].mxu0  ;;  %1768 = vrot.lane.b32.xlu0 %v3251_v16, %s3397_s21 }
0x11c2   :  { %v3132_v18 = vadd.f32 %v3613_v55, %v1924_v17  ;;  %v2902_v19 = vpop.f32.mrb[15].mxu0 }
0x11c4   :  { %3252 = vtanh.f32 %v3132_v18  ;;  %v2540_v25 = vmul.f32 -1.442695, %v3132_v18 }
0x11c5   :  { %3254 = vpow2.f32 %v2537_v22 }
0x11c6   :  { %3256 = vpow2.f32 %v2540_v25 }
0x11ce   :  { %v3253_v21 = vpop.eup %3252 }
0x11cf   :  { %1938 = vrot.lane.b32.xlu1 %v3253_v21, %s3397_s21  ;;  %v3255_v24 = vpop.eup %3254 }
0x11d0   :  { %v1759_v26 = vadd.f32 1.0, %v3255_v24  ;;  %v3257_v27 = vpop.eup %3256 }
0x11d1   :  { %v1932_v28 = vadd.f32 1.0, %v3257_v27 }
0x11d2   :  { %3258 = vrcp.f32 %v1759_v26 }
0x11d3   :  { %3260 = vrcp.f32 %v1932_v28 }
0x11dc   :  { %v3259_v23 = vpop.eup %3258 }
0x11dd   :  { %v3261_v31 = vpop.eup %3260  ;;  %v1766_v35 = vmul.f32 %v3259_v23, %v1764_v34 }
0x11de   :  { %v1936_v39 = vmul.f32 %v3261_v31, %v3781_v63 }
0x1233   :  { %v1769_v29 = vpop.permute.xlu0 %1768 }
0x1234   :  { %v1771_v30 = vmul.f32 %v3259_v23, %v1769_v29 }
0x1236   :  { %1773 = vrot.lane.b32.xlu0 %v1771_v30, %s3398_s3 }
0x1241   :  { %v1939_v32 = vpop.permute.xlu1 %1938 }
0x1242   :  { %v1941_v33 = vmul.f32 %v3261_v31, %v1939_v32 }
0x1244   :  { %1943 = vrot.lane.b32.xlu1 %v1941_v33, %s3398_s3 }
0x12a8   :  { %v1774_v36 = vpop.permute.xlu0 %1773 }
0x12a9   :  { %v3815_v37 = vadd.f32 %v1774_v36, %v1766_v35 }
0x12ab   :  { %3262 = vtanh.f32 %v3815_v37  ;;  %v2041_v9 = vrot.slane %v3815_v37, 6 }
0x12b5   :  { %v3263_v10 = vpop.eup %3262 }
0x12b6   :  { %v1944_v41 = vpop.permute.xlu1 %1943  ;;  %1779 = vrot.lane.b32.xlu0 %v3263_v10, %s3397_s21  ;;  %v2407_v10 = vld [vmem:[%s3891_s7 + $0x8] sm:$0xff] }
0x12b7   :  { %v3820_v15 = vadd.f32 %v1944_v41, %v1936_v39  ;;  %v2408_v39 = vld [vmem:[%s3891_s7 + $0x10] sm:$0xff] }
0x12b9   :  { %3264 = vtanh.f32 %v3820_v15 }
0x12c3   :  { %v3265_v42 = vpop.eup %3264 }
0x12c4   :  { %1949 = vrot.lane.b32.xlu1 %v3265_v42, %s3397_s21 }
0x1328   :  { %v1780_v43 = vpop.permute.xlu0 %1779 }
0x1329   :  { %v1782_v44 = vmul.f32 %v3259_v23, %v1780_v43 }
0x132b   :  { %v1954_v45 = vrot.slane %v1782_v44, 4 }
0x132d   :  { %1955 = vrot.lane.b32.xlu0 %v1954_v45, %s3398_s3 }
0x1336   :  { %v1950_v47 = vpop.permute.xlu1 %1949 }
0x1337   :  { %v1952_v48 = vmul.f32 %v3261_v31, %v1950_v47 }
0x1339   :  { %2131 = vrot.lane.b32.xlu1 %v1952_v48, %s3398_s3  ;;  %v2549_v48 = vld [vmem:[#allocation2] ss:$0 sm:$0xff] }
0x139f   :  { %v1956_v49 = vpop.permute.xlu0 %1955 }
0x13a0   :  { %2912 = vmatmul.mubr.msk.f32.vlgmr.msra.gmra.mrb[12].mxu1 %vm115_vm1, %v1956_v49 }
0x13a1   :  { %3099 = vmatpush3.bf16.msra.mxu1 %v3574_v38  ;;  %2922 = vmatprep.mubr.msk.f32.mxu1 %vm3395_vm0, %v3396_v2 }
0x13a2   :  { %3100 = vmatprep.subr.bf16.mxu1 %v3394_v1 }
0x13a5   :  { %3102 = vmatpush3.bf16.msra.mxu1 %v3577_v40 }
0x13a6   :  { %3103 = vmatprep.subr.bf16.mxu1 %v3394_v1 }
0x13a8   :  { %2923 = vmatmul.mubr.msk.f32.vlgmr.msra.gmra.mrb[14].mxu1 %vm115_vm1, %v1956_v49 }
0x13a9   :  { %3105 = vmatpush3.bf16.msra.mxu1 %v3584_v46  ;;  %2933 = vmatprep.mubr.msk.f32.mxu1 %vm3395_vm0, %v3396_v2 }
0x13aa   :  { %3106 = vmatprep.subr.bf16.mxu1 %v3394_v1 }
0x13ab   :  { %v2132_v38 = vpop.permute.xlu1 %2131 }
0x13ad   :  { %3108 = vmatpush3.bf16.msra.mxu1 %v3589_v50 }
0x13ae   :  { %3121 = vmatprep.subr.bf16.mxu1 %v3394_v1 }
0x13b0   :  { %2934 = vmatmul.mubr.msk.f32.vlgmr.msra.gmra.mrb[14].mxu1 %vm115_vm1, %v2132_v38 }
0x13b1   :  { %2966 = vmatprep.mubr.msk.f32.mxu1 %vm3395_vm0, %v3396_v2 }
0x1473   :  { %v2025_v40 = vpop.f32.mrb[12].mxu1 }
0x1474   :  { %v2030_v51 = vrot.slane %v2025_v40, 2  ;;  %v2913_v52 = vpop.f32.mrb[13].mxu1 }
0x1476   :  { %v2032_v53 = vadd.f32 %v2030_v51, %v3564_v20 }
0x1478   :  { %3266 = vtanh.f32 %v2032_v53  ;;  %v2542_v60 = vmul.f32 -1.442695, %v2032_v53 }
0x1482   :  { %v3267_v54 = vpop.eup %3266 }
0x1483   :  { %v2201_v56 = vpop.f32.mrb[14].mxu1  ;;  %2045 = vrot.lane.b32.xlu0 %v3267_v54, %s3397_s21 }
0x1484   :  { %v3133_v57 = vadd.f32 %v3613_v55, %v2201_v56  ;;  %v2935_v58 = vpop.f32.mrb[15].mxu1 }
0x1486   :  { %3268 = vtanh.f32 %v3133_v57  ;;  %v2545_v62 = vmul.f32 -1.442695, %v3133_v57 }
0x1487   :  { %3270 = vpow2.f32 %v2542_v60 }
0x1488   :  { %3272 = vpow2.f32 %v2545_v62 }
0x1490   :  { %v3269_v59 = vpop.eup %3268 }
0x1491   :  { %2215 = vrot.lane.b32.xlu1 %v3269_v59, %s3397_s21  ;;  %v3271_v61 = vpop.eup %3270 }
0x1492   :  { %v2036_v63 = vadd.f32 1.0, %v3271_v61  ;;  %v3273_v20 = vpop.eup %3272 }
0x1493   :  { %v2209_v3 = vadd.f32 1.0, %v3273_v20 }
0x1494   :  { %3274 = vrcp.f32 %v2036_v63 }
0x1495   :  { %3276 = vrcp.f32 %v2209_v3 }
0x149e   :  { %v3275_v0 = vpop.eup %3274 }
0x149f   :  { %v3277_v6 = vpop.eup %3276  ;;  %v2043_v11 = vmul.f32 %v3275_v0, %v2041_v9 }
0x14a0   :  { %v2213_v16 = vmul.f32 %v3277_v6, %v3820_v15  ;;  %v2409_v15 = vld [vmem:[%s3891_s7 + $0x18] sm:$0xff] }
0x14a1   :  { %v3125_v42 = vpack.c.bf16 %v2409_v15, %v2408_v39 }
0x14f5   :  { %v2046_v4 = vpop.permute.xlu0 %2045 }
0x14f6   :  { %v2048_v5 = vmul.f32 %v3275_v0, %v2046_v4 }
0x14f8   :  { %2050 = vrot.lane.b32.xlu0 %v2048_v5, %s3398_s3 }
0x1503   :  { %v2216_v7 = vpop.permute.xlu1 %2215 }
0x1504   :  { %v2218_v8 = vmul.f32 %v3277_v6, %v2216_v7 }
0x1506   :  { %2220 = vrot.lane.b32.xlu1 %v2218_v8, %s3398_s3 }
0x156a   :  { %v2051_v12 = vpop.permute.xlu0 %2050 }
0x156b   :  { %v2053_v13 = vadd.f32 %v2051_v12, %v2043_v11 }
0x156d   :  { %3278 = vtanh.f32 %v2053_v13 }
0x1577   :  { %v3279_v14 = vpop.eup %3278 }
0x1578   :  { %v2221_v17 = vpop.permute.xlu1 %2220  ;;  %2056 = vrot.lane.b32.xlu0 %v3279_v14, %s3397_s21 }
0x1579   :  { %v2223_v18 = vadd.f32 %v2221_v17, %v2213_v16 }
0x157b   :  { %3280 = vtanh.f32 %v2223_v18 }
0x1585   :  { %v3281_v19 = vpop.eup %3280 }
0x1586   :  { %2226 = vrot.lane.b32.xlu1 %v3281_v19, %s3397_s21 }
0x15ea   :  { %v2057_v21 = vpop.permute.xlu0 %2056 }
0x15eb   :  { %v2059_v22 = vmul.f32 %v3275_v0, %v2057_v21 }
0x15ed   :  { %v2231_v24 = vrot.slane %v2059_v22, 6 }
0x15ef   :  { %2232 = vrot.lane.b32.xlu0 %v2231_v24, %s3398_s3 }
0x15f8   :  { %v2227_v25 = vpop.permute.xlu1 %2226 }
0x15f9   :  { %v2229_v26 = vmul.f32 %v3277_v6, %v2227_v25 }
0x15fb   :  { %2307 = vrot.lane.b32.xlu1 %v2229_v26, %s3398_s3 }
0x1661   :  { %v2233_v27 = vpop.permute.xlu0 %2232 }
0x1662   :  { %2945 = vmatmul.mubr.msk.f32.vlgmr.msra.gmra.mrb[16].mxu0 %vm115_vm1, %v2233_v27 }
0x1663   :  { %3117 = vmatpush3.bf16.msra.mxu0 %v3584_v46  ;;  %2955 = vmatprep.mubr.msk.f32.mxu0 %vm3395_vm0, %v3396_v2 }
0x1664   :  { %3118 = vmatprep.subr.bf16.mxu0 %v3394_v1 }
0x1667   :  { %3120 = vmatpush3.bf16.msra.mxu0 %v3589_v50 }
0x166d   :  { %v2308_v23 = vpop.permute.xlu1 %2307 }
0x166e   :  { %2956 = vmatmul.mubr.msk.f32.vlgmr.msra.gmra.mrb[16].mxu0 %vm115_vm1, %v2308_v23 }
0x1741   :  { %v2377_v28 = vpop.f32.mrb[16].mxu0 }
0x1742   :  { %v3134_v29 = vadd.f32 %v3613_v55, %v2377_v28  ;;  %v2957_v30 = vpop.f32.mrb[17].mxu0  ;;  %v2406_v55 = vld [vmem:[%s3891_s7] sm:$0xff] }
0x1743   :  { %v3122_v41 = vpack.c.bf16 %v2407_v10, %v2406_v55 }
0x1744   :  { %3282 = vtanh.f32 %v3134_v29  ;;  %v2548_v32 = vmul.f32 -1.442695, %v3134_v29 }
0x1745   :  { %3123 = vmatpush3.bf16.msra.mxu1 %v3122_v41 }
0x1746   :  { %3284 = vpow2.f32 %v2548_v32  ;;  %3124 = vmatprep.subr.bf16.mxu1 %v3394_v1 }
0x1749   :  { %3126 = vmatpush3.bf16.msra.mxu1 %v3125_v42 }
0x174e   :  { %v3283_v31 = vpop.eup %3282 }
0x174f   :  { %2391 = vrot.lane.b32.xlu0 %v3283_v31, %s3397_s21 }
0x1750   :  { %v3285_v46 = vpop.eup %3284 }
0x1751   :  { %v2385_v33 = vadd.f32 1.0, %v3285_v46 }
0x1753   :  { %3286 = vrcp.f32 %v2385_v33 }
0x175d   :  { %v3287_v2 = vpop.eup %3286 }
0x175e   :  { %v2389_v50 = vmul.f32 %v3287_v2, %v2223_v18 }
0x17c1   :  { %v2392_v34 = vpop.permute.xlu0 %2391 }
0x17c2   :  { %v2394_v35 = vmul.f32 %v3287_v2, %v2392_v34 }
0x17c4   :  { %2396 = vrot.lane.b32.xlu1 %v2394_v35, %s3398_s3 }
0x1836   :  { %v2397_v36 = vpop.permute.xlu1 %2396 }
0x1837   :  { %v2399_v37 = vadd.f32 %v2397_v36, %v2389_v50 }
0x1839   :  { %3288 = vtanh.f32 %v2399_v37 }
0x1843   :  { %v3289_v43 = vpop.eup %3288 }
0x1844   :  { %2402 = vrot.lane.b32.xlu0 %v3289_v43, %s3397_s21 }
0x18b6   :  { %v2403_v44 = vpop.permute.xlu0 %2402 }
0x18b7   :  { %v2405_v45 = vmul.f32 %v3287_v2, %v2403_v44 }
0x18b9   :  { %2418 = vrot.lane.b32.xlu1 %v2405_v45, %s3398_s3 }
0x192b   :  { %v2419_v47 = vpop.permute.xlu1 %2418 }
0x192c   :  { %2967 = vmatmul.mubr.msk.f32.vlgmr.msra.gmra.mrb[16].mxu1 %vm115_vm1, %v2419_v47 }
0x19ff   :  { %v2488_v49 = vpop.f32.mrb[16].mxu1 }
0x1a00   :  { %v2489_v38 = vadd.f32 %v2549_v48, %v2488_v49  ;;  %v2968_v40 = vpop.f32.mrb[17].mxu1 }
0x1a02   :  { %v2551_v51 = vmul.f32 -1.442695, %v2489_v38 }
0x1a04   :  { %3290 = vpow2.f32 %v2551_v51 }
0x1a0e   :  { %v3291_v52 = vpop.eup %3290 }
0x1a0f   :  { %v2495_v53 = vadd.f32 1.0, %v3291_v52 }
0x1a11   :  { %3292 = vrcp.f32 %v2495_v53 }
0x1a1b   :  { %v3293_v1 = vpop.eup %3292 }
0x1a1c   :  { %2499 = vst.msk [vmem:[%s3893_s9] sm:$0x3] %vm2498_vm2, %v3293_v1 }
0x1a1d   :  { %2504 = vsyncpa [#allocation4], 1 }
0x1a1e   :  { %2505 = vsyncpa [#allocation6], 1 }
0x1a1f   :  { %2506 = vsyncpa [#allocation9], 1 }

</bundles_post_ra>
